<compile_context>
chip_gen: v7x
topology: tpu7x:2x2x1
jax: 0.10.0
libtpu: 0.0.40
codegen_flags: <defaults>
</compile_context>

<pallas_src>
import jax
import jax.numpy as jnp
from jax.experimental import pallas as pl
from jax.experimental.pallas import tpu as pltpu

K = 7  # first conv kernel size (fixed by the module)


def _round_up(x, m):
    return (x + m - 1) // m * m


# ---------------------------------------------------------------------------
# Fused kernel: snake -> dilated conv7 -> snake -> conv1x1 -> + residual
# ---------------------------------------------------------------------------
def _make_residual_unit_kernel(dilation, l_tile, halo_blk, n_tiles):
    halo = (K - 1) // 2 * dilation  # = 3 * dilation

    def kernel(xc_ref, xl_ref, xr_ref,
               a1_ref, ia1_ref, w1_ref, b1_ref,
               a2_ref, ia2_ref, w2_ref, b2_ref,
               o_ref, s1_ref, acc_ref):
        i = pl.program_id(1)

        xc = xc_ref[...]                                     # (T, C) f32
        # Halo rows from the neighbouring blocks. At the sequence boundaries
        # the mask reproduces the conv's zero padding exactly (snake(0) == 0).
        left_m = (i > 0).astype(jnp.float32)
        right_m = (i < n_tiles - 1).astype(jnp.float32)
        xl = xl_ref[halo_blk - halo:, :] * left_m            # (halo, C)
        xr = xr_ref[:halo, :] * right_m                      # (halo, C)
        xw = jnp.concatenate([xl, xc, xr], axis=0)           # (T + 2*halo, C)

        # Snake #1 (f32), written once to VMEM scratch; taps read from the ref.
        # 1/alpha is precomputed on the host (exact) -> no approx reciprocal.
        a1 = a1_ref[...]
        s1_ref[...] = xw + ia1_ref[...] * jnp.sin(a1 * xw) ** 2

        # Dilated k=7 conv = 7 MXU matmuls (bf16 operands, f32 accumulation).
        acc_ref[...] = jnp.zeros_like(acc_ref)
        for t in range(K):                                   # static unroll
            s0 = t * dilation
            tap = s1_ref[s0:s0 + l_tile, :].astype(jnp.bfloat16)
            acc_ref[...] += jnp.dot(tap, w1_ref[t],
                                    preferred_element_type=jnp.float32)
        # TODO(synk): for very narrow C (<128) the K taps could be packed into
        # one (T, K*C) @ (K*C, C) contraction for higher MXU utilization.
        y = acc_ref[...] + b1_ref[...]

        # Snake #2 -> 1x1 conv -> bias -> residual add.
        a2 = a2_ref[...]
        s2 = y + ia2_ref[...] * jnp.sin(a2 * y) ** 2
        y2 = jnp.dot(s2.astype(jnp.bfloat16), w2_ref[...],
                     preferred_element_type=jnp.float32) + b2_ref[...]
        # TODO(synk): with C < 128 the output store is lane-masked; a folded
        # lane-dense output layout would be faster for tiny-channel layers.
        o_ref[...] = (xc + y2).astype(o_ref.dtype)

    return kernel


def residual_unit(x, params, *, dilation=1, l_tile=256):
    """Fused ResidualUnit forward. x: (B, L, C) float32, channels-last."""
    B, L, C = x.shape
    halo = (K - 1) * dilation // 2            # 3 * dilation
    halo_blk = _round_up(halo, 8)             # neighbour-block rows (8-aligned)
    T = _round_up(min(l_tile, L), halo_blk)   # L tile, multiple of halo_blk
    n_tiles = -(-L // T)
    L_t = n_tiles * T
    x_in = x if L_t == L else jnp.pad(x, ((0, 0), (0, L_t - L), (0, 0)))
    n_hblk = L_t // halo_blk
    t_blk = T // halo_blk

    a1 = params["a1"].reshape(1, C).astype(jnp.float32)
    a2 = params["a2"].reshape(1, C).astype(jnp.float32)
    inv_a1 = 1.0 / (a1 + 1e-9)                # exact, computed once on host
    inv_a2 = 1.0 / (a2 + 1e-9)
    b1 = params["b1"].reshape(1, C).astype(jnp.float32)
    b2 = params["b2"].reshape(1, C).astype(jnp.float32)
    w1 = params["w1"].astype(jnp.bfloat16)    # (K, C, C) per-tap matmul weights
    w2 = params["w2"].astype(jnp.bfloat16)    # (C, C)    1x1 conv weight

    kernel = _make_residual_unit_kernel(dilation, T, halo_blk, n_tiles)

    out = pl.pallas_call(
        kernel,
        out_shape=jax.ShapeDtypeStruct((B, L_t, C), jnp.float32),
        grid=(B, n_tiles),
        in_specs=[
            # center tile
            pl.BlockSpec((None, T, C), lambda b, i: (b, i, 0)),
            # left / right halo blocks (clamped at the edges; masked in-kernel)
            pl.BlockSpec((None, halo_blk, C),
                         lambda b, i: (b, jnp.maximum(i * t_blk - 1, 0), 0)),
            pl.BlockSpec((None, halo_blk, C),
                         lambda b, i: (b, jnp.minimum((i + 1) * t_blk,
                                                      n_hblk - 1), 0)),
            pl.BlockSpec((1, C), lambda b, i: (0, 0)),        # alpha1
            pl.BlockSpec((1, C), lambda b, i: (0, 0)),        # 1/alpha1
            pl.BlockSpec((K, C, C), lambda b, i: (0, 0, 0)),  # w1 (resident)
            pl.BlockSpec((1, C), lambda b, i: (0, 0)),        # b1
            pl.BlockSpec((1, C), lambda b, i: (0, 0)),        # alpha2
            pl.BlockSpec((1, C), lambda b, i: (0, 0)),        # 1/alpha2
            pl.BlockSpec((C, C), lambda b, i: (0, 0)),        # w2 (resident)
            pl.BlockSpec((1, C), lambda b, i: (0, 0)),        # b2
        ],
        out_specs=pl.BlockSpec((None, T, C), lambda b, i: (b, i, 0)),
        scratch_shapes=[
            pltpu.VMEM((T + 2 * halo, C), jnp.float32),       # snake#1 output
            pltpu.VMEM((T, C), jnp.float32),                  # f32 accumulator
        ],
        compiler_params=pltpu.CompilerParams(
            dimension_semantics=("parallel", "parallel")),
    )(x_in, x_in, x_in, a1, inv_a1, w1, b1, a2, inv_a2, w2, b2)

    return out[:, :L, :] if L_t != L else out


# ---------------------------------------------------------------------------
# Parameter construction (weight-norm applied in glue) and pure-JAX reference
# ---------------------------------------------------------------------------
def _wn_conv1d(key, cin, cout, k):
    kv, kg, kb = jax.random.split(key, 3)
    v = jax.random.normal(kv, (cout, cin, k), jnp.float32) * 0.1
    g = 1.0 + 0.1 * jax.random.normal(kg, (cout,), jnp.float32)
    b = 0.1 * jax.random.normal(kb, (cout,), jnp.float32)
    norm = jnp.sqrt(jnp.sum(v * v, axis=(1, 2), keepdims=True))
    w = g[:, None, None] * v / norm               # weight_norm(dim=0)
    return jnp.transpose(w, (2, 1, 0)), b         # (k, cin, cout), (cout,)


def init_residual_unit_params(key, dim):
    k1, k2, k3, k4 = jax.random.split(key, 4)
    w1, b1 = _wn_conv1d(k1, dim, dim, K)
    w2, b2 = _wn_conv1d(k2, dim, dim, 1)
    return {
        "a1": 1.0 + 0.1 * jax.random.normal(k3, (dim,), jnp.float32),
        "a2": 1.0 + 0.1 * jax.random.normal(k4, (dim,), jnp.float32),
        "w1": w1, "b1": b1,
        "w2": w2[0], "b2": b2,
    }


def residual_unit_ref(x, params, dilation):
    """Pure-JAX reference, mirroring the kernel's bf16 MXU operands."""
    def snake(v, a):
        a = a.reshape(1, 1, -1).astype(jnp.float32)
        inv_a = 1.0 / (a + 1e-9)
        return v + inv_a * jnp.sin(a * v) ** 2

    B, L, C = x.shape
    pad = (K - 1) * dilation // 2
    s1 = snake(x, params["a1"]).astype(jnp.bfloat16).astype(jnp.float32)
    s1 = jnp.pad(s1, ((0, 0), (pad, pad), (0, 0)))
    w1 = params["w1"].astype(jnp.bfloat16).astype(jnp.float32)
    acc = jnp.zeros((B, L, C), jnp.float32)
    for t in range(K):
        acc = acc + jnp.einsum("blc,cd->bld",
                               s1[:, t * dilation:t * dilation + L, :], w1[t])
    y = acc + params["b1"].reshape(1, 1, C)
    s2 = snake(y, params["a2"]).astype(jnp.bfloat16).astype(jnp.float32)
    w2 = params["w2"].astype(jnp.bfloat16).astype(jnp.float32)
    y2 = jnp.einsum("blc,cd->bld", s2, w2) + params["b2"].reshape(1, 1, C)
    return x + y2


if __name__ == "__main__":
    # Channels-last (B, L, C); equivalent PyTorch input is (B, C, L) = (2, 16, 64)
    B, L, C = 2, 64, 16
    key = jax.random.PRNGKey(0)
    kx, kp = jax.random.split(key)
    x = jax.random.normal(kx, (B, L, C), jnp.float32)

    # (dilation, l_tile): exercises multi-tile halos for d=1/3/9, the
    # ragged-tail path (l_tile=24 -> L padded 64 -> 72 internally), and the
    # single-tile path (l_tile=64).
    for dilation, l_tile in ((1, 16), (3, 16), (9, 16), (1, 24), (1, 64)):
        params = init_residual_unit_params(jax.random.fold_in(kp, dilation), C)
        y = residual_unit(x, params, dilation=dilation, l_tile=l_tile)
        y = jax.block_until_ready(y)
        assert y.shape == (B, L, C), y.shape
        assert bool(jnp.all(jnp.isfinite(y)))
        y_ref = residual_unit_ref(x, params, dilation)
        err = float(jnp.max(jnp.abs(y - y_ref)))
        assert err < 1e-2, f"dilation={dilation} l_tile={l_tile} max err {err}"

    print("KERNEL_OK")
</pallas_src>

<mosaic_0001>
module attributes {stable_mosaic.version = 11 : i64} {
  func.func @kernel(%arg0: i32, %arg1: i32, %arg2: memref<1x16x16xf32, #tpu.memory_space<vmem>>, %arg3: memref<1x8x16xf32, #tpu.memory_space<vmem>>, %arg4: memref<1x8x16xf32, #tpu.memory_space<vmem>>, %arg5: memref<1x16xf32, #tpu.memory_space<vmem>>, %arg6: memref<1x16xf32, #tpu.memory_space<vmem>>, %arg7: memref<7x16x16xbf16, #tpu.memory_space<vmem>>, %arg8: memref<1x16xf32, #tpu.memory_space<vmem>>, %arg9: memref<1x16xf32, #tpu.memory_space<vmem>>, %arg10: memref<1x16xf32, #tpu.memory_space<vmem>>, %arg11: memref<16x16xbf16, #tpu.memory_space<vmem>>, %arg12: memref<1x16xf32, #tpu.memory_space<vmem>>, %arg13: memref<1x16x16xf32, #tpu.memory_space<vmem>>, %arg14: memref<22x16xf32, #tpu.memory_space<vmem>>, %arg15: memref<16x16xf32, #tpu.memory_space<vmem>>) attributes {dimension_semantics = [#tpu.dimension_semantics<parallel>, #tpu.dimension_semantics<parallel>], iteration_bounds = array<i64: 2, 4>, scalar_prefetch = 0 : i64, scratch_operands = 2 : i64, tpu.core_type = #tpu.core_type<tc>, window_params = [{transform_indices = @transform_0, window_bounds = array<i64: 1, 16, 16>}, {transform_indices = @transform_1, window_bounds = array<i64: 1, 8, 16>}, {transform_indices = @transform_2, window_bounds = array<i64: 1, 8, 16>}, {pipeline_mode = #tpu.pipeline_mode<synchronous>, transform_indices = @transform_3, window_bounds = array<i64: 1, 16>}, {pipeline_mode = #tpu.pipeline_mode<synchronous>, transform_indices = @transform_4, window_bounds = array<i64: 1, 16>}, {pipeline_mode = #tpu.pipeline_mode<synchronous>, transform_indices = @transform_5, window_bounds = array<i64: 7, 16, 16>}, {pipeline_mode = #tpu.pipeline_mode<synchronous>, transform_indices = @transform_6, window_bounds = array<i64: 1, 16>}, {pipeline_mode = #tpu.pipeline_mode<synchronous>, transform_indices = @transform_7, window_bounds = array<i64: 1, 16>}, {pipeline_mode = #tpu.pipeline_mode<synchronous>, transform_indices = @transform_8, window_bounds = array<i64: 1, 16>}, {pipeline_mode = #tpu.pipeline_mode<synchronous>, transform_indices = @transform_9, window_bounds = array<i64: 16, 16>}, {pipeline_mode = #tpu.pipeline_mode<synchronous>, transform_indices = @transform_10, window_bounds = array<i64: 1, 16>}, {transform_indices = @transform_11, window_bounds = array<i64: 1, 16, 16>}]} {
    %c0 = arith.constant 0 : index
    %c0_0 = arith.constant 0 : index
    %c0_1 = arith.constant 0 : index
    %0 = vector.load %arg2[%c0, %c0_0, %c0_1] : memref<1x16x16xf32, #tpu.memory_space<vmem>>, vector<1x16x16xf32>
    %1 = vector.shape_cast %0 : vector<1x16x16xf32> to vector<16x16xf32>
    %c0_i32 = arith.constant 0 : i32
    %2 = arith.cmpi sgt, %arg1, %c0_i32 : i32
    %3 = arith.extui %2 : i1 to i32
    %4 = arith.sitofp %3 : i32 to f32
    %c3_i32 = arith.constant 3 : i32
    %5 = arith.cmpi slt, %arg1, %c3_i32 : i32
    %6 = arith.extui %5 : i1 to i32
    %7 = arith.sitofp %6 : i32 to f32
    %c0_2 = arith.constant 0 : index
    %c5 = arith.constant 5 : index
    %c0_3 = arith.constant 0 : index
    %8 = vector.load %arg3[%c0_2, %c5, %c0_3] : memref<1x8x16xf32, #tpu.memory_space<vmem>>, vector<1x3x16xf32>
    %9 = vector.shape_cast %8 : vector<1x3x16xf32> to vector<3x16xf32>
    %10 = vector.broadcast %4 : f32 to vector<3x16xf32>
    %11 = arith.mulf %9, %10 : vector<3x16xf32>
    %c0_4 = arith.constant 0 : index
    %c0_5 = arith.constant 0 : index
    %c0_6 = arith.constant 0 : index
    %12 = vector.load %arg4[%c0_4, %c0_5, %c0_6] : memref<1x8x16xf32, #tpu.memory_space<vmem>>, vector<1x3x16xf32>
    %13 = vector.shape_cast %12 : vector<1x3x16xf32> to vector<3x16xf32>
    %14 = vector.broadcast %7 : f32 to vector<3x16xf32>
    %15 = arith.mulf %13, %14 : vector<3x16xf32>
    %16 = tpu.concatenate %11, %1, %15 in 0 : vector<3x16xf32>, vector<16x16xf32>, vector<3x16xf32> -> vector<22x16xf32>
    %c0_7 = arith.constant 0 : index
    %c0_8 = arith.constant 0 : index
    %17 = vector.load %arg5[%c0_7, %c0_8] : memref<1x16xf32, #tpu.memory_space<vmem>>, vector<1x16xf32>
    %c0_9 = arith.constant 0 : index
    %c0_10 = arith.constant 0 : index
    %18 = vector.load %arg6[%c0_9, %c0_10] : memref<1x16xf32, #tpu.memory_space<vmem>>, vector<1x16xf32>
    %19 = vector.broadcast %17 : vector<1x16xf32> to vector<22x16xf32>
    %20 = arith.mulf %19, %16 : vector<22x16xf32>
    %21 = math.sin %20 : vector<22x16xf32>
    %22 = arith.mulf %21, %21 : vector<22x16xf32>
    %23 = vector.broadcast %18 : vector<1x16xf32> to vector<22x16xf32>
    %24 = arith.mulf %23, %22 : vector<22x16xf32>
    %25 = arith.addf %16, %24 : vector<22x16xf32>
    %c0_11 = arith.constant 0 : index
    %c0_12 = arith.constant 0 : index
    %26 = vector.load %arg14[%c0_11, %c0_12] : memref<22x16xf32, #tpu.memory_space<vmem>>, vector<22x16xf32>
    tpu.vector_store %arg14[%c0_11, %c0_12], %25 {strides = array<i32>} : memref<22x16xf32, #tpu.memory_space<vmem>>, vector<22x16xf32>,
    %cst = arith.constant 0.000000e+00 : f32
    %27 = vector.broadcast %cst : f32 to vector<16x16xf32>
    %c0_13 = arith.constant 0 : index
    %c0_14 = arith.constant 0 : index
    %28 = vector.load %arg15[%c0_13, %c0_14] : memref<16x16xf32, #tpu.memory_space<vmem>>, vector<16x16xf32>
    tpu.vector_store %arg15[%c0_13, %c0_14], %27 {strides = array<i32>} : memref<16x16xf32, #tpu.memory_space<vmem>>, vector<16x16xf32>,
    %c0_15 = arith.constant 0 : index
    %c0_16 = arith.constant 0 : index
    %29 = vector.load %arg14[%c0_15, %c0_16] : memref<22x16xf32, #tpu.memory_space<vmem>>, vector<16x16xf32>
    %30 = arith.truncf %29 : vector<16x16xf32> to vector<16x16xbf16>
    %c0_17 = arith.constant 0 : index
    %c0_18 = arith.constant 0 : index
    %31 = vector.load %arg15[%c0_17, %c0_18] : memref<16x16xf32, #tpu.memory_space<vmem>>, vector<16x16xf32>
    %c0_19 = arith.constant 0 : index
    %c0_20 = arith.constant 0 : index
    %c0_21 = arith.constant 0 : index
    %32 = vector.load %arg7[%c0_19, %c0_20, %c0_21] : memref<7x16x16xbf16, #tpu.memory_space<vmem>>, vector<1x16x16xbf16>
    %33 = vector.shape_cast %32 : vector<1x16x16xbf16> to vector<16x16xbf16>
    %cst_22 = arith.constant dense<0.000000e+00> : vector<16x16xf32>
    %34 = tpu.matmul %30, %33, %cst_22 {dimension_numbers = #tpu.dot_dimension_numbers<[1], [0], [0], [1], [0, 0, 1, 1], [], []>} : vector<16x16xbf16>, vector<16x16xbf16>, vector<16x16xf32> -> vector<16x16xf32>
    %35 = arith.addf %31, %34 : vector<16x16xf32>
    %c0_23 = arith.constant 0 : index
    %c0_24 = arith.constant 0 : index
    %36 = vector.load %arg15[%c0_23, %c0_24] : memref<16x16xf32, #tpu.memory_space<vmem>>, vector<16x16xf32>
    tpu.vector_store %arg15[%c0_23, %c0_24], %35 {strides = array<i32>} : memref<16x16xf32, #tpu.memory_space<vmem>>, vector<16x16xf32>,
    %c1 = arith.constant 1 : index
    %c0_25 = arith.constant 0 : index
    %37 = vector.load %arg14[%c1, %c0_25] : memref<22x16xf32, #tpu.memory_space<vmem>>, vector<16x16xf32>
    %38 = arith.truncf %37 : vector<16x16xf32> to vector<16x16xbf16>
    %c0_26 = arith.constant 0 : index
    %c0_27 = arith.constant 0 : index
    %39 = vector.load %arg15[%c0_26, %c0_27] : memref<16x16xf32, #tpu.memory_space<vmem>>, vector<16x16xf32>
    %c1_28 = arith.constant 1 : index
    %c0_29 = arith.constant 0 : index
    %c0_30 = arith.constant 0 : index
    %40 = vector.load %arg7[%c1_28, %c0_29, %c0_30] : memref<7x16x16xbf16, #tpu.memory_space<vmem>>, vector<1x16x16xbf16>
    %41 = vector.shape_cast %40 : vector<1x16x16xbf16> to vector<16x16xbf16>
    %cst_31 = arith.constant dense<0.000000e+00> : vector<16x16xf32>
    %42 = tpu.matmul %38, %41, %cst_31 {dimension_numbers = #tpu.dot_dimension_numbers<[1], [0], [0], [1], [0, 0, 1, 1], [], []>} : vector<16x16xbf16>, vector<16x16xbf16>, vector<16x16xf32> -> vector<16x16xf32>
    %43 = arith.addf %39, %42 : vector<16x16xf32>
    %c0_32 = arith.constant 0 : index
    %c0_33 = arith.constant 0 : index
    %44 = vector.load %arg15[%c0_32, %c0_33] : memref<16x16xf32, #tpu.memory_space<vmem>>, vector<16x16xf32>
    tpu.vector_store %arg15[%c0_32, %c0_33], %43 {strides = array<i32>} : memref<16x16xf32, #tpu.memory_space<vmem>>, vector<16x16xf32>,
    %c2 = arith.constant 2 : index
    %c0_34 = arith.constant 0 : index
    %45 = vector.load %arg14[%c2, %c0_34] : memref<22x16xf32, #tpu.memory_space<vmem>>, vector<16x16xf32>
    %46 = arith.truncf %45 : vector<16x16xf32> to vector<16x16xbf16>
    %c0_35 = arith.constant 0 : index
    %c0_36 = arith.constant 0 : index
    %47 = vector.load %arg15[%c0_35, %c0_36] : memref<16x16xf32, #tpu.memory_space<vmem>>, vector<16x16xf32>
    %c2_37 = arith.constant 2 : index
    %c0_38 = arith.constant 0 : index
    %c0_39 = arith.constant 0 : index
    %48 = vector.load %arg7[%c2_37, %c0_38, %c0_39] : memref<7x16x16xbf16, #tpu.memory_space<vmem>>, vector<1x16x16xbf16>
    %49 = vector.shape_cast %48 : vector<1x16x16xbf16> to vector<16x16xbf16>
    %cst_40 = arith.constant dense<0.000000e+00> : vector<16x16xf32>
    %50 = tpu.matmul %46, %49, %cst_40 {dimension_numbers = #tpu.dot_dimension_numbers<[1], [0], [0], [1], [0, 0, 1, 1], [], []>} : vector<16x16xbf16>, vector<16x16xbf16>, vector<16x16xf32> -> vector<16x16xf32>
    %51 = arith.addf %47, %50 : vector<16x16xf32>
    %c0_41 = arith.constant 0 : index
    %c0_42 = arith.constant 0 : index
    %52 = vector.load %arg15[%c0_41, %c0_42] : memref<16x16xf32, #tpu.memory_space<vmem>>, vector<16x16xf32>
    tpu.vector_store %arg15[%c0_41, %c0_42], %51 {strides = array<i32>} : memref<16x16xf32, #tpu.memory_space<vmem>>, vector<16x16xf32>,
    %c3 = arith.constant 3 : index
    %c0_43 = arith.constant 0 : index
    %53 = vector.load %arg14[%c3, %c0_43] : memref<22x16xf32, #tpu.memory_space<vmem>>, vector<16x16xf32>
    %54 = arith.truncf %53 : vector<16x16xf32> to vector<16x16xbf16>
    %c0_44 = arith.constant 0 : index
    %c0_45 = arith.constant 0 : index
    %55 = vector.load %arg15[%c0_44, %c0_45] : memref<16x16xf32, #tpu.memory_space<vmem>>, vector<16x16xf32>
    %c3_46 = arith.constant 3 : index
    %c0_47 = arith.constant 0 : index
    %c0_48 = arith.constant 0 : index
    %56 = vector.load %arg7[%c3_46, %c0_47, %c0_48] : memref<7x16x16xbf16, #tpu.memory_space<vmem>>, vector<1x16x16xbf16>
    %57 = vector.shape_cast %56 : vector<1x16x16xbf16> to vector<16x16xbf16>
    %cst_49 = arith.constant dense<0.000000e+00> : vector<16x16xf32>
    %58 = tpu.matmul %54, %57, %cst_49 {dimension_numbers = #tpu.dot_dimension_numbers<[1], [0], [0], [1], [0, 0, 1, 1], [], []>} : vector<16x16xbf16>, vector<16x16xbf16>, vector<16x16xf32> -> vector<16x16xf32>
    %59 = arith.addf %55, %58 : vector<16x16xf32>
    %c0_50 = arith.constant 0 : index
    %c0_51 = arith.constant 0 : index
    %60 = vector.load %arg15[%c0_50, %c0_51] : memref<16x16xf32, #tpu.memory_space<vmem>>, vector<16x16xf32>
    tpu.vector_store %arg15[%c0_50, %c0_51], %59 {strides = array<i32>} : memref<16x16xf32, #tpu.memory_space<vmem>>, vector<16x16xf32>,
    %c4 = arith.constant 4 : index
    %c0_52 = arith.constant 0 : index
    %61 = vector.load %arg14[%c4, %c0_52] : memref<22x16xf32, #tpu.memory_space<vmem>>, vector<16x16xf32>
    %62 = arith.truncf %61 : vector<16x16xf32> to vector<16x16xbf16>
    %c0_53 = arith.constant 0 : index
    %c0_54 = arith.constant 0 : index
    %63 = vector.load %arg15[%c0_53, %c0_54] : memref<16x16xf32, #tpu.memory_space<vmem>>, vector<16x16xf32>
    %c4_55 = arith.constant 4 : index
    %c0_56 = arith.constant 0 : index
    %c0_57 = arith.constant 0 : index
    %64 = vector.load %arg7[%c4_55, %c0_56, %c0_57] : memref<7x16x16xbf16, #tpu.memory_space<vmem>>, vector<1x16x16xbf16>
    %65 = vector.shape_cast %64 : vector<1x16x16xbf16> to vector<16x16xbf16>
    %cst_58 = arith.constant dense<0.000000e+00> : vector<16x16xf32>
    %66 = tpu.matmul %62, %65, %cst_58 {dimension_numbers = #tpu.dot_dimension_numbers<[1], [0], [0], [1], [0, 0, 1, 1], [], []>} : vector<16x16xbf16>, vector<16x16xbf16>, vector<16x16xf32> -> vector<16x16xf32>
    %67 = arith.addf %63, %66 : vector<16x16xf32>
    %c0_59 = arith.constant 0 : index
    %c0_60 = arith.constant 0 : index
    %68 = vector.load %arg15[%c0_59, %c0_60] : memref<16x16xf32, #tpu.memory_space<vmem>>, vector<16x16xf32>
    tpu.vector_store %arg15[%c0_59, %c0_60], %67 {strides = array<i32>} : memref<16x16xf32, #tpu.memory_space<vmem>>, vector<16x16xf32>,
    %c5_61 = arith.constant 5 : index
    %c0_62 = arith.constant 0 : index
    %69 = vector.load %arg14[%c5_61, %c0_62] : memref<22x16xf32, #tpu.memory_space<vmem>>, vector<16x16xf32>
    %70 = arith.truncf %69 : vector<16x16xf32> to vector<16x16xbf16>
    %c0_63 = arith.constant 0 : index
    %c0_64 = arith.constant 0 : index
    %71 = vector.load %arg15[%c0_63, %c0_64] : memref<16x16xf32, #tpu.memory_space<vmem>>, vector<16x16xf32>
    %c5_65 = arith.constant 5 : index
    %c0_66 = arith.constant 0 : index
    %c0_67 = arith.constant 0 : index
    %72 = vector.load %arg7[%c5_65, %c0_66, %c0_67] : memref<7x16x16xbf16, #tpu.memory_space<vmem>>, vector<1x16x16xbf16>
    %73 = vector.shape_cast %72 : vector<1x16x16xbf16> to vector<16x16xbf16>
    %cst_68 = arith.constant dense<0.000000e+00> : vector<16x16xf32>
    %74 = tpu.matmul %70, %73, %cst_68 {dimension_numbers = #tpu.dot_dimension_numbers<[1], [0], [0], [1], [0, 0, 1, 1], [], []>} : vector<16x16xbf16>, vector<16x16xbf16>, vector<16x16xf32> -> vector<16x16xf32>
    %75 = arith.addf %71, %74 : vector<16x16xf32>
    %c0_69 = arith.constant 0 : index
    %c0_70 = arith.constant 0 : index
    %76 = vector.load %arg15[%c0_69, %c0_70] : memref<16x16xf32, #tpu.memory_space<vmem>>, vector<16x16xf32>
    tpu.vector_store %arg15[%c0_69, %c0_70], %75 {strides = array<i32>} : memref<16x16xf32, #tpu.memory_space<vmem>>, vector<16x16xf32>,
    %c6 = arith.constant 6 : index
    %c0_71 = arith.constant 0 : index
    %77 = vector.load %arg14[%c6, %c0_71] : memref<22x16xf32, #tpu.memory_space<vmem>>, vector<16x16xf32>
    %78 = arith.truncf %77 : vector<16x16xf32> to vector<16x16xbf16>
    %c0_72 = arith.constant 0 : index
    %c0_73 = arith.constant 0 : index
    %79 = vector.load %arg15[%c0_72, %c0_73] : memref<16x16xf32, #tpu.memory_space<vmem>>, vector<16x16xf32>
    %c6_74 = arith.constant 6 : index
    %c0_75 = arith.constant 0 : index
    %c0_76 = arith.constant 0 : index
    %80 = vector.load %arg7[%c6_74, %c0_75, %c0_76] : memref<7x16x16xbf16, #tpu.memory_space<vmem>>, vector<1x16x16xbf16>
    %81 = vector.shape_cast %80 : vector<1x16x16xbf16> to vector<16x16xbf16>
    %cst_77 = arith.constant dense<0.000000e+00> : vector<16x16xf32>
    %82 = tpu.matmul %78, %81, %cst_77 {dimension_numbers = #tpu.dot_dimension_numbers<[1], [0], [0], [1], [0, 0, 1, 1], [], []>} : vector<16x16xbf16>, vector<16x16xbf16>, vector<16x16xf32> -> vector<16x16xf32>
    %83 = arith.addf %79, %82 : vector<16x16xf32>
    %c0_78 = arith.constant 0 : index
    %c0_79 = arith.constant 0 : index
    %84 = vector.load %arg15[%c0_78, %c0_79] : memref<16x16xf32, #tpu.memory_space<vmem>>, vector<16x16xf32>
    tpu.vector_store %arg15[%c0_78, %c0_79], %83 {strides = array<i32>} : memref<16x16xf32, #tpu.memory_space<vmem>>, vector<16x16xf32>,
    %c0_80 = arith.constant 0 : index
    %c0_81 = arith.constant 0 : index
    %85 = vector.load %arg15[%c0_80, %c0_81] : memref<16x16xf32, #tpu.memory_space<vmem>>, vector<16x16xf32>
    %c0_82 = arith.constant 0 : index
    %c0_83 = arith.constant 0 : index
    %86 = vector.load %arg8[%c0_82, %c0_83] : memref<1x16xf32, #tpu.memory_space<vmem>>, vector<1x16xf32>
    %87 = vector.broadcast %86 : vector<1x16xf32> to vector<16x16xf32>
    %88 = arith.addf %85, %87 : vector<16x16xf32>
    %c0_84 = arith.constant 0 : index
    %c0_85 = arith.constant 0 : index
    %89 = vector.load %arg9[%c0_84, %c0_85] : memref<1x16xf32, #tpu.memory_space<vmem>>, vector<1x16xf32>
    %c0_86 = arith.constant 0 : index
    %c0_87 = arith.constant 0 : index
    %90 = vector.load %arg10[%c0_86, %c0_87] : memref<1x16xf32, #tpu.memory_space<vmem>>, vector<1x16xf32>
    %91 = vector.broadcast %89 : vector<1x16xf32> to vector<16x16xf32>
    %92 = arith.mulf %91, %88 : vector<16x16xf32>
    %93 = math.sin %92 : vector<16x16xf32>
    %94 = arith.mulf %93, %93 : vector<16x16xf32>
    %95 = vector.broadcast %90 : vector<1x16xf32> to vector<16x16xf32>
    %96 = arith.mulf %95, %94 : vector<16x16xf32>
    %97 = arith.addf %88, %96 : vector<16x16xf32>
    %98 = arith.truncf %97 : vector<16x16xf32> to vector<16x16xbf16>
    %c0_88 = arith.constant 0 : index
    %c0_89 = arith.constant 0 : index
    %99 = vector.load %arg11[%c0_88, %c0_89] : memref<16x16xbf16, #tpu.memory_space<vmem>>, vector<16x16xbf16>
    %cst_90 = arith.constant dense<0.000000e+00> : vector<16x16xf32>
    %100 = tpu.matmul %98, %99, %cst_90 {dimension_numbers = #tpu.dot_dimension_numbers<[1], [0], [0], [1], [0, 0, 1, 1], [], []>} : vector<16x16xbf16>, vector<16x16xbf16>, vector<16x16xf32> -> vector<16x16xf32>
    %c0_91 = arith.constant 0 : index
    %c0_92 = arith.constant 0 : index
    %101 = vector.load %arg12[%c0_91, %c0_92] : memref<1x16xf32, #tpu.memory_space<vmem>>, vector<1x16xf32>
    %102 = vector.broadcast %101 : vector<1x16xf32> to vector<16x16xf32>
    %103 = arith.addf %100, %102 : vector<16x16xf32>
    %104 = arith.addf %1, %103 : vector<16x16xf32>
    %c0_93 = arith.constant 0 : index
    %c0_94 = arith.constant 0 : index
    %c0_95 = arith.constant 0 : index
    %105 = vector.load %arg13[%c0_93, %c0_94, %c0_95] : memref<1x16x16xf32, #tpu.memory_space<vmem>>, vector<1x16x16xf32>
    %106 = vector.shape_cast %105 : vector<1x16x16xf32> to vector<16x16xf32>
    %107 = vector.shape_cast %104 : vector<16x16xf32> to vector<1x16x16xf32>
    tpu.vector_store %arg13[%c0_93, %c0_94, %c0_95], %107 {strides = array<i32>} : memref<1x16x16xf32, #tpu.memory_space<vmem>>, vector<1x16x16xf32>,
    return
  }
  func.func @transform_0(%arg0: i32, %arg1: i32) -> (i32, i32, i32) {
    %c0_i32 = arith.constant 0 : i32
    %c0_i32_0 = arith.constant 0 : i32
    return %arg0, %arg1, %c0_i32 : i32, i32, i32
  }
  func.func @transform_1(%arg0: i32, %arg1: i32) -> (i32, i32, i32) {
    %c2_i32 = arith.constant 2 : i32
    %0 = arith.muli %arg1, %c2_i32 : i32
    %c1_i32 = arith.constant 1 : i32
    %1 = arith.subi %0, %c1_i32 : i32
    %c0_i32 = arith.constant 0 : i32
    %2 = arith.maxsi %1, %c0_i32 : i32
    %c0_i32_0 = arith.constant 0 : i32
    %c0_i32_1 = arith.constant 0 : i32
    return %arg0, %2, %c0_i32_0 : i32, i32, i32
  }
  func.func @transform_2(%arg0: i32, %arg1: i32) -> (i32, i32, i32) {
    %c1_i32 = arith.constant 1 : i32
    %0 = arith.addi %arg1, %c1_i32 : i32
    %c2_i32 = arith.constant 2 : i32
    %1 = arith.muli %0, %c2_i32 : i32
    %c7_i32 = arith.constant 7 : i32
    %2 = arith.minsi %1, %c7_i32 : i32
    %c0_i32 = arith.constant 0 : i32
    %c0_i32_0 = arith.constant 0 : i32
    return %arg0, %2, %c0_i32 : i32, i32, i32
  }
  func.func @transform_3(%arg0: i32, %arg1: i32) -> (i32, i32) {
    %c0_i32 = arith.constant 0 : i32
    %c0_i32_0 = arith.constant 0 : i32
    %c0_i32_1 = arith.constant 0 : i32
    return %c0_i32, %c0_i32_0 : i32, i32
  }
  func.func @transform_4(%arg0: i32, %arg1: i32) -> (i32, i32) {
    %c0_i32 = arith.constant 0 : i32
    %c0_i32_0 = arith.constant 0 : i32
    %c0_i32_1 = arith.constant 0 : i32
    return %c0_i32, %c0_i32_0 : i32, i32
  }
  func.func @transform_5(%arg0: i32, %arg1: i32) -> (i32, i32, i32) {
    %c0_i32 = arith.constant 0 : i32
    %c0_i32_0 = arith.constant 0 : i32
    %c0_i32_1 = arith.constant 0 : i32
    %c0_i32_2 = arith.constant 0 : i32
    return %c0_i32, %c0_i32_0, %c0_i32_1 : i32, i32, i32
  }
  func.func @transform_6(%arg0: i32, %arg1: i32) -> (i32, i32) {
    %c0_i32 = arith.constant 0 : i32
    %c0_i32_0 = arith.constant 0 : i32
    %c0_i32_1 = arith.constant 0 : i32
    return %c0_i32, %c0_i32_0 : i32, i32
  }
  func.func @transform_7(%arg0: i32, %arg1: i32) -> (i32, i32) {
    %c0_i32 = arith.constant 0 : i32
    %c0_i32_0 = arith.constant 0 : i32
    %c0_i32_1 = arith.constant 0 : i32
    return %c0_i32, %c0_i32_0 : i32, i32
  }
  func.func @transform_8(%arg0: i32, %arg1: i32) -> (i32, i32) {
    %c0_i32 = arith.constant 0 : i32
    %c0_i32_0 = arith.constant 0 : i32
    %c0_i32_1 = arith.constant 0 : i32
    return %c0_i32, %c0_i32_0 : i32, i32
  }
  func.func @transform_9(%arg0: i32, %arg1: i32) -> (i32, i32) {
    %c0_i32 = arith.constant 0 : i32
    %c0_i32_0 = arith.constant 0 : i32
    %c0_i32_1 = arith.constant 0 : i32
    return %c0_i32, %c0_i32_0 : i32, i32
  }
  func.func @transform_10(%arg0: i32, %arg1: i32) -> (i32, i32) {
    %c0_i32 = arith.constant 0 : i32
    %c0_i32_0 = arith.constant 0 : i32
    %c0_i32_1 = arith.constant 0 : i32
    return %c0_i32, %c0_i32_0 : i32, i32
  }
  func.func @transform_11(%arg0: i32, %arg1: i32) -> (i32, i32, i32) {
    %c0_i32 = arith.constant 0 : i32
    %c0_i32_0 = arith.constant 0 : i32
    return %arg0, %arg1, %c0_i32 : i32, i32, i32
  }
}

</mosaic_0001>

<bundles_post_ra>
// kernel: tpu_custom_call.1
= control target key start
LH: loop header
LB: loop body
LE: loop exit
PB: predicated region body
PF: predicated region fallthrough
CT: control target
= control target key end

     0   :  { %s2148_s17 = smov 0   ;;  %s2150_s18 = smov 0   ;;  %s2681_s0 = inlined_call_operand.vmem [shape: f32[2,64,16], index: 0, kind: input, shape index: {}]   ;;  %s2682_s1 = inlined_call_operand.vmem [shape: f32[2,64,16], index: 1, kind: input, shape index: {}]   ;;  %s2683_s2 = inlined_call_operand.vmem [shape: f32[2,64,16], index: 2, kind: input, shape index: {}]   ;;  %s2684_s3 = inlined_call_operand.vmem [shape: f32[1,16], index: 3, kind: input, shape index: {}]   ;;  %s2685_s4 = inlined_call_operand.vmem [shape: f32[1,16], index: 4, kind: input, shape index: {}]   ;;  %s2686_s5 = inlined_call_operand.vmem [shape: bf16[7,16,16], index: 5, kind: input, shape index: {}]   ;;  %s2687_s6 = inlined_call_operand.vmem [shape: f32[1,16], index: 6, kind: input, shape index: {}]   ;;  %s2688_s7 = inlined_call_operand.vmem [shape: f32[1,16], index: 7, kind: input, shape index: {}]   ;;  %s2689_s8 = inlined_call_operand.vmem [shape: f32[1,16], index: 8, kind: input, shape index: {}]   ;;  %s2690_s9 = inlined_call_operand.vmem [shape: bf16[16,16], index: 9, kind: input, shape index: {}]   ;;  %s2691_s10 = inlined_call_operand.vmem [shape: f32[1,16], index: 10, kind: input, shape index: {}]   ;;  %s2692_s11 = inlined_call_operand.vmem [shape: f32[2,64,16], index: 11, kind: output, shape index: {}]  }
   0x1   :  { %s2152_s19 = smov 0   ;;  %s2154_s20 = smov 0  }
   0x2   :  { %s2156_s21 = smov 0  }
   0x3 LB: > { %s30_s22 = sadd.s32 1, %s2070_s19  ;;  %s33_s23 = sadd.s32 1, %s2074_s20  ;;  %s2078_s21 = sphi %s2156_s21, %s21_s21   ;;  %s2074_s20 = sphi %s2154_s20, %s2703_s20   ;;  %s2070_s19 = sphi %s2152_s19, %s2702_s19   ;;  %s2066_s18 = sphi %s2150_s18, %s2701_s18   ;;  %s2062_s17 = sphi %s2148_s17, %s2700_s17  }
   0x4   : > { %p31_p0 = scmp.ge.s32.totalorder %s30_s22, 4  ;;  %p1792_p1 = scmp.ge.s32.totalorder %s2078_s21, 1 }
   0x5   : > { %p420_p2 = scmp.lt.s32.totalorder %s2078_s21, 9 }
   0x6   : > { %s2705_s22 = smov (%p31_p0, %s30_s22), 0  ;;  %s2707_s23 = smov (!%p31_p0, %s33_s23), %s2074_s20 }
   0x7   : > { %p421_p3 = pnand %p1792_p1, %p420_p2  ;;  %p35_p4 = scmp.ge.s32.totalorder %s2707_s23, 2 }
   0x8   : > { %v2010_v0 = vld [vmem:[%s2686_s5] sm:$0xff] (!%p421_p3)   ;;  %v2080_v1 = vmov (!%p421_p3), 0.0   ;;  %s2185_s26 = sshll.u32 (!%p421_p3), %s2062_s17, 1  ;;  %p493_p5 = scmp.lt.s32.totalorder (!%p421_p3), %s2066_s18, 1  ;;  %vm2081_vm0 = vmmov (!%p421_p3), 0   ;;  %vm911_vm1 = vcmask (!%p421_p3), 130048  }
   0x9   : > { %s2709_s23 = smov (%p35_p4, %s2707_s23), 0  ;;  %424 = sbr.rel (%p421_p3) target bundleno = 757 (0x2f5), region = 64 }
   0xa   : > { %1894 = vmatprep.subr.bf16.mxu0 (!%p421_p3), %v2080_v1  ;;  %1900 = vmatprep.subr.bf16.mxu1 (!%p421_p3), %v2080_v1  ;;  %p495_p6 = scmp.lt.s32.totalorder (!%p421_p3), %s2185_s26, 7  ;;  %s1797_s27 = sadd.s32 (!%p421_p3), 4294967295, %s2185_s26  ;;  %916 = vst.msk [vmem:[#allocation3] sm:$0xff] (!%p421_p3), %vm911_vm1, %v2080_v1  ;;  %917 = vst.msk [vmem:[#allocation3 + $0x8] sm:$0xff] (!%p421_p3), %vm911_vm1, %v2080_v1  ;;  %v2011_v2 = vld [vmem:[%s2686_s5 + $0x8] sm:$0xff] (!%p421_p3)   ;;  %vm561_vm2 = vcmask (!%p421_p3), 1042432  }
   0xb   : > { %1895 = vmatpush3.bf16.msra.mxu0 (!%p421_p3), %v2010_v0  ;;  %1896 = vmatprep.mubr.msk.bf16.mxu0 (!%p421_p3), %vm2081_vm0, %v2080_v1  ;;  %p504_p7 = scmp.gt.s32.totalorder (!%p421_p3), %s1797_s27, 0  ;;  %p1798_p8 = scmp.lt.s32.totalorder (!%p421_p3), %s1797_s27, 7  ;;  %v2219_v3 = vld [vmem:[%s2684_s3] ss:$0 sm:$0xff] (!%p421_p3)  ;;  %v2082_v33 = vmov (!%p421_p3), 683565275  }
   0xc   : > { %1902 = vmatprep.mubr.msk.bf16.mxu1 (!%p421_p3), %vm2081_vm0, %v2080_v1  ;;  %1906 = vmatprep.subr.bf16.mxu0 (!%p421_p3), %v2080_v1  ;;  %p547_p9 = scmp.gt.s32.totalorder (!%p421_p3), %s2062_s17, 0  ;;  %p550_p11 = scmp.lt.s32.totalorder (!%p421_p3), %s2062_s17, 3  ;;  %v2083_v36 = vmov (!%p421_p3), 2475754826   ;;  %v2084_v38 = vmov (!%p421_p3), 2131351028  }
   0xd   : > { %1901 = vmatpush3.bf16.msra.mxu1 (!%p421_p3), %v2011_v2  ;;  %v2085_v40 = vmov (!%p421_p3), 2102212464   ;;  %v2086_v46 = vmov (!%p421_p3), 920167782   ;;  %v2087_v49 = vmov (!%p421_p3), 1326507024  }
   0xe   : > { %1912 = vmatprep.subr.bf16.mxu1 (!%p421_p3), %v2080_v1 }
  0x10   : > { %s2711_s18 = smov (!%p493_p5, %s2066_s18), 1 }
  0x11   : > { %s496_s28 = scalar_select %p495_p6, %s2185_s26, 7 }
  0x12   : > { %s2203_s12 = sshll.u32 %s2711_s18, 3 }
  0x13   : > { %s498_s13 = sadd.s32 %s2203_s12, %s496_s28  ;;  %s1877_s28 = sadd.s32 2, %s2185_s26 }
  0x14   : > { %s2206_s14 = sshll.u32 %s498_s13, 3  ;;  %p2233_p10 = scmp.lt.s32.totalorder %s1877_s28, 7 }
  0x15   : > { %s2214_s24 = scalar_lea.vmem %s2681_s0, %s2206_s14 }
  0x16   : > { %s505_s29 = scalar_select %p504_p7, %s1797_s27, 0  ;;  %v545_v4 = vld [vmem:[%s2214_s24] sm:$0xff]  ;;  %v2224_v5 = vld [vmem:[%s2214_s24 + $0x8] sm:$0xff] }
  0x17   : > { %s548_s30 = scalar_select %p547_p9, 1, 0  ;;  %v562_v6 = vrot.slane %v545_v4, 5  ;;  %v563_v7 = vrot.slane %v2224_v5, 5 }
  0x18   : > { %s2713_s29 = smov (!%p1798_p8, %s505_s29), 7  ;;  %s2715_s28 = smov (!%p2233_p10, %s1877_s28), 7 }
  0x19   : > { %s549_s13 = scvt.s32.f32 %s548_s30  ;;  %v2231_v8 = vsel %vm561_vm2, %v562_v6, %v563_v7  ;;  %s511_s15 = sadd.s32 %s2713_s29, %s2203_s12 }
  0x1a   : > { %v2240_v9 = vmul.f32 %v2219_v3, %v2231_v8  ;;  %s1804_s27 = sshll.u32 %s511_s15, 3  ;;  %s2717_s28 = smov (!%p2233_p10, %s2715_s28), 7 }
  0x1b   : > { %v554_v10 = vstv %s549_s13  ;;  %s513_s18 = scalar_lea.vmem %s2682_s1, %s1804_s27  ;;  %s527_s30 = sadd.s32 %s2203_s12, %s2717_s28 }
  0x1c   : > { %v691_v11 = vand.u32 2139095040, %v2240_v9  ;;  %v553_v12 = vld [vmem:[%s513_s18 + $0x5] sm:$0x7]  ;;  %v688_v15 = vand.u32 2147483647, %v2240_v9  ;;  %s1810_s17 = sshll.u32 %s527_s30, 3  ;;  %s542_s28 = scalar_lea.vmem %s2692_s11, %s2206_s14 }
  0x1d   : > { %v555_v13 = vmul.f32 %v554_v10, %v553_v12  ;;  %s551_s29 = scalar_select %p550_p11, 1, 0 }
  0x1e   : > { %v692_v14 = vshrl.u32 %v691_v11, 23  ;;  %v695_v22 = vand.u32 8388607, %v688_v15  ;;  %s529_s12 = scalar_lea.vmem %s2683_s2, %s1810_s17 }
  0x1f   : > { %v2253_v16 = vsel %vm561_vm2, %v555_v13, %v562_v6  ;;  %s552_s13 = scvt.s32.f32 %s551_s29  ;;  %v556_v42 = vld [vmem:[%s529_s12] sm:$0x7] }
  0x20   : > { %v1819_v17 = vadd.s32 4294967169, %v692_v14  ;;  %v2257_v18 = vmul.f32 %v2219_v3, %v2253_v16  ;;  %v696_v28 = vor.u32 8388608, %v695_v22 }
  0x21   : > { %v557_v29 = vstv %s552_s13 }
  0x22   : > { %v698_v19 = vadd.s32 1, %v1819_v17  ;;  %v584_v20 = vand.u32 2147483647, %v2257_v18  ;;  %v587_v21 = vand.u32 2139095040, %v2257_v18  ;;  %v2283_v51 = vshll.u32 %v696_v28, 8 }
  0x23   : > { %v2288_v55 = vmul.f32 %v557_v29, %v556_v42 }
  0x24   : > { %vm699_vm3 = vcmp.gt.s32.totalorder %v698_v19, 0  ;;  %v588_v23 = vshrl.u32 %v587_v21, 23  ;;  %v591_v24 = vand.u32 8388607, %v584_v20 }
  0x25   : > { %v700_v25 = vsel %vm699_vm3, %v698_v19, 0  ;;  %vm586_vm3 = vcmp.lt.s32.totalorder %v2257_v18, 0 }
  0x26   : > { %v702_v26 = vand.u32 31, %v700_v25  ;;  %v1815_v27 = vadd.s32 4294967169, %v588_v23  ;;  %v592_v30 = vor.u32 8388608, %v591_v24  ;;  %v2269_v31 = vshrl.u32 %v700_v25, 5 }
  0x28   : > { %v703_v32 = vsub.s32 32, %v702_v26  ;;  %v705_v34 = vshll.u32 %v2082_v33, %v702_v26  ;;  %v594_v35 = vadd.s32 1, %v1815_v27  ;;  %v708_v37 = vshll.u32 %v2083_v36, %v702_v26 }
  0x29   : > { %v711_v39 = vshll.u32 %v2084_v38, %v702_v26  ;;  %v714_v41 = vshll.u32 %v2085_v40, %v702_v26  ;;  %v2279_v47 = vshll.u32 %v2086_v46, %v702_v26  ;;  %v2285_v53 = vshll.u32 %v592_v30, 8 }
  0x2a   : > { %v706_v43 = vshrl.u32 %v2083_v36, %v703_v32  ;;  %v709_v44 = vshrl.u32 %v2084_v38, %v703_v32  ;;  %v712_v45 = vshrl.u32 %v2085_v40, %v703_v32  ;;  %vm595_vm4 = vcmp.gt.s32.totalorder %v594_v35, 0 }
  0x2b   : > { %v715_v48 = vshrl.u32 %v2086_v46, %v703_v32  ;;  %v718_v50 = vshrl.u32 %v2087_v49, %v703_v32  ;;  %v596_v52 = vsel %vm595_vm4, %v594_v35, 0  ;;  %v704_v54 = vshrl.u32 %v2082_v33, %v703_v32 }
  0x2c   : > { %v598_v56 = vand.u32 31, %v596_v52  ;;  %v707_v57 = vor.u32 %v706_v43, %v705_v34  ;;  %v710_v58 = vor.u32 %v709_v44, %v708_v37  ;;  %vm720_vm5 = vcmp.lt.s32.totalorder %v2269_v31, 1 }
  0x2d   : > { %v597_v59 = vshrl.u32 %v596_v52, 5  ;;  %v713_v60 = vor.u32 %v712_v45, %v711_v39  ;;  %v716_v61 = vor.u32 %v715_v48, %v714_v41  ;;  %v719_v62 = vor.u32 %v718_v50, %v2279_v47 }
  0x2e   : > { %v599_v63 = vsub.s32 32, %v598_v56  ;;  %v601_v0 = vshll.u32 %v2082_v33, %v598_v56  ;;  %v604_v2 = vshll.u32 %v2083_v36, %v598_v56  ;;  %v607_v4 = vshll.u32 %v2084_v38, %v598_v56 }
  0x2f   : > { %vm721_vm6 = vcmp.lt.s32.totalorder %v2269_v31, 2  ;;  %v610_v6 = vshll.u32 %v2085_v40, %v598_v56  ;;  %v613_v10 = vshll.u32 %v2086_v46, %v598_v56  ;;  %vm722_vm7 = vcmp.lt.s32.totalorder %v2269_v31, 3 }
  0x30   : > { %vm723_vm8 = vcmp.lt.s32.totalorder %v2269_v31, 4  ;;  %v600_v11 = vshrl.u32 %v2082_v33, %v599_v63  ;;  %v602_v12 = vshrl.u32 %v2083_v36, %v599_v63  ;;  %v605_v13 = vshrl.u32 %v2084_v38, %v599_v63 }
  0x31   : > { %v608_v14 = vshrl.u32 %v2085_v40, %v599_v63  ;;  %v611_v17 = vshrl.u32 %v2086_v46, %v599_v63  ;;  %v614_v19 = vshrl.u32 %v2087_v49, %v599_v63  ;;  %vm616_vm9 = vcmp.lt.s32.totalorder %v597_v59, 1 }
  0x32   : > { %v724_v21 = vsel %vm720_vm5, %v704_v54, %v707_v57  ;;  %v603_v22 = vor.u32 %v602_v12, %v601_v0  ;;  %v606_v23 = vor.u32 %v605_v13, %v604_v2  ;;  %vm619_vm10 = vcmp.lt.s32.totalorder %v597_v59, 4 }
  0x33   : > { %v609_v24 = vor.u32 %v608_v14, %v607_v4  ;;  %v612_v25 = vor.u32 %v611_v17, %v610_v6  ;;  %v615_v26 = vor.u32 %v614_v19, %v613_v10  ;;  %vm617_vm11 = vcmp.lt.s32.totalorder %v597_v59, 2 }
  0x34   : > { %vm618_vm12 = vcmp.lt.s32.totalorder %v597_v59, 3  ;;  %v620_v27 = vsel %vm616_vm9, %v600_v11, %v603_v22  ;;  %v624_v29 = vsel %vm616_vm9, %v603_v22, %v606_v23  ;;  %v725_v37 = vsel %vm723_vm8, %v713_v60, 2102212464 }
  0x35   : > { %v621_v28 = vsel %vm619_vm10, %v609_v24, 2102212464  ;;  %v628_v30 = vsel %vm616_vm9, %v606_v23, %v609_v24  ;;  %v625_v34 = vsel %vm619_vm10, %v612_v25, 920167782  ;;  %v629_v35 = vsel %vm619_vm10, %v615_v26, 1326507024 }
  0x36   : > { %v622_v32 = vsel %vm618_vm12, %v606_v23, %v621_v28  ;;  %v626_v39 = vsel %vm618_vm12, %v609_v24, %v625_v34  ;;  %v630_v41 = vsel %vm618_vm12, %v612_v25, %v629_v35  ;;  %v728_v42 = vsel %vm720_vm5, %v707_v57, %v710_v58 }
  0x37   : > { %v729_v43 = vsel %vm723_vm8, %v716_v61, 920167782  ;;  %v623_v44 = vsel %vm617_vm11, %v620_v27, %v622_v32  ;;  %v627_v45 = vsel %vm617_vm11, %v624_v29, %v626_v39  ;;  %v631_v47 = vsel %vm617_vm11, %v628_v30, %v630_v41 }
  0x38   : > { %v730_v48 = vsel %vm722_vm7, %v713_v60, %v729_v43  ;;  %v2320_v50 = vmul.u32.u64.low %v2285_v53, %v631_v47  ;;  %v2321_v52 = vmul.u32.u64.high %v2285_v53, %v631_v47, %v2320_v50  ;;  %v726_v57 = vsel %vm722_vm7, %v710_v58, %v725_v37 }
  0x39   : > { %v2324_v54 = vmul.u32.u64.low %v2285_v53, %v627_v45  ;;  %v2325_v56 = vmul.u32.u64.high %v2285_v53, %v627_v45, %v2324_v54  ;;  %v731_v63 = vsel %vm721_vm6, %v728_v42, %v730_v48  ;;  %v732_v59 = vsel %vm720_vm5, %v710_v58, %v713_v60 }
  0x3a   : > { %v733_v0 = vsel %vm723_vm8, %v719_v62, 1326507024  ;;  %v2338_v4 = vmul.u32.u64.low %v2283_v51, %v731_v63  ;;  %v2339_v6 = vmul.u32.u64.high %v2283_v51, %v731_v63, %v2338_v4  ;;  %v569_v10 = vrot.slane %v2288_v55, 5 }
  0x3b   : > { %v734_v2 = vsel %vm722_vm7, %v716_v61, %v733_v0  ;;  %v639_v11 = vmul.u32 %v2285_v53, %v623_v44  ;;  %vm641_vm13 = vc.u32 %v2321_v52, %v2324_v54  ;;  %v642_v58 = vadd.s32 1, %v2325_v56 }
  0x3c   : > { %v735_v12 = vsel %vm721_vm6, %v732_v59, %v734_v2  ;;  %v727_v60 = vsel %vm721_vm6, %v724_v21, %v726_v57  ;;  %v2352_v61 = vsel %vm561_vm2, %v563_v7, %v569_v10  ;;  %v746_v14 = vadd.s32 1, %v2339_v6 }
  0x3d   : > { %v2355_v62 = vmul.u32.u64.low %v2283_v51, %v735_v12  ;;  %v2356_v55 = vmul.u32.u64.high %v2283_v51, %v735_v12, %v2355_v62  ;;  %v2360_v53 = vmul.f32 %v2219_v3, %v2352_v61  ;;  %v643_v13 = vsel %vm641_vm13, %v642_v58, %v2325_v56 }
  0x3e   : > { %v644_v17 = vadd.s32 %v643_v13, %v639_v11  ;;  %v743_v31 = vmul.u32 %v2283_v51, %v727_v60  ;;  %v640_v42 = vadd.s32 %v2324_v54, %v2321_v52  ;;  %vm2403_vm6 = vcmp.le.f32.partialorder %v584_v20, 0.7853982 }
  0x3f   : > { %v795_v5 = vand.u32 2139095040, %v2360_v53  ;;  %vm745_vm14 = vc.u32 %v2356_v55, %v2338_v4  ;;  %v792_v51 = vand.u32 2147483647, %v2360_v53  ;;  %v744_v43 = vadd.s32 %v2338_v4, %v2356_v55 }
  0x40   : > { %v645_v19 = vadd.s32 536870912, %v644_v17  ;;  %v747_v7 = vsel %vm745_vm14, %v746_v14, %v2339_v6  ;;  %vm2458_vm10 = vcmp.le.f32.partialorder %v688_v15, 0.7853982  ;;  %vm690_vm11 = vcmp.lt.s32.totalorder %v2240_v9, 0 }
  0x41   : > { %v796_v21 = vshrl.u32 %v795_v5, 23  ;;  %v748_v23 = vadd.s32 %v747_v7, %v743_v31  ;;  %v799_v37 = vand.u32 8388607, %v792_v51 }
  0x42   : > { %v2368_v22 = vshrl.u32 %v645_v19, 30 }
  0x43   : > { %v1823_v3 = vadd.s32 4294967169, %v796_v21  ;;  %v749_v25 = vadd.s32 536870912, %v748_v23  ;;  %v800_v50 = vor.u32 8388608, %v799_v37 }
  0x44   : > { %v647_v24 = vshll.u32 %v2368_v22, 30  ;;  %v670_v48 = vsub.s32 4, %v2368_v22 }
  0x45   : > { %v802_v26 = vadd.s32 1, %v1823_v3  ;;  %v2371_v28 = vshrl.u32 %v749_v25, 30  ;;  %v2394_v62 = vshll.u32 %v800_v50, 8 }
  0x46   : > { %v648_v27 = vsub.s32 %v644_v17, %v647_v24 }
  0x47   : > { %vm803_vm15 = vcmp.gt.s32.totalorder %v802_v26, 0  ;;  %v751_v30 = vshll.u32 %v2371_v28, 30 }
  0x48   : > { %v650_v29 = vsub.s32 0, %v648_v27  ;;  %v804_v32 = vsel %vm803_vm15, %v802_v26, 0 }
  0x49   : > { %v2375_v35 = vsub.s32 %v748_v23, %v751_v30  ;;  %v806_v39 = vand.u32 31, %v804_v32  ;;  %v2383_v56 = vshrl.u32 %v804_v32, 5 }
  0x4a   : > { %v1816_v34 = vmin.u32 %v650_v29, %v648_v27 }
  0x4b   : > { %v754_v44 = vsub.s32 0, %v2375_v35  ;;  %v807_v45 = vsub.s32 32, %v806_v39  ;;  %v809_v63 = vshll.u32 %v2082_v33, %v806_v39  ;;  %v812_v0 = vshll.u32 %v2083_v36, %v806_v39 }
  0x4c   : > { %v652_v41 = vclz %v1816_v34  ;;  %v815_v54 = vshll.u32 %v2084_v38, %v806_v39  ;;  %v818_v10 = vshll.u32 %v2085_v40, %v806_v39  ;;  %v821_v7 = vshll.u32 %v2086_v46, %v806_v39 }
  0x4d   : > { %v1820_v57 = vmin.u32 %v754_v44, %v2375_v35  ;;  %v810_v59 = vshrl.u32 %v2083_v36, %v807_v45  ;;  %v813_v52 = vshrl.u32 %v2084_v38, %v807_v45  ;;  %v816_v2 = vshrl.u32 %v2085_v40, %v807_v45 }
  0x4e   : > { %v1817_v47 = vadd.s32 4294967294, %v652_v41  ;;  %v819_v11 = vshrl.u32 %v2086_v46, %v807_v45  ;;  %v808_v13 = vshrl.u32 %v2082_v33, %v807_v45  ;;  %v822_v23 = vshrl.u32 %v2087_v49, %v807_v45 }
  0x4f   : > { %v756_v6 = vclz %v1820_v57  ;;  %v811_v14 = vor.u32 %v810_v59, %v809_v63  ;;  %v814_v17 = vor.u32 %v813_v52, %v812_v0  ;;  %v817_v19 = vor.u32 %v816_v2, %v815_v54 }
  0x50   : > { %vm1818_vm2 = vcmp.lt.s32.totalorder %v1817_v47, 0  ;;  %v820_v21 = vor.u32 %v819_v11, %v818_v10  ;;  %vm824_vm5 = vcmp.lt.s32.totalorder %v2383_v56, 1  ;;  %vm825_vm7 = vcmp.lt.s32.totalorder %v2383_v56, 2 }
  0x51   : > { %v655_v4 = vsel %vm1818_vm2, 0, %v1817_v47  ;;  %v1821_v55 = vadd.s32 4294967294, %v756_v6  ;;  %vm826_vm8 = vcmp.lt.s32.totalorder %v2383_v56, 3  ;;  %v823_v37 = vor.u32 %v822_v23, %v821_v7 }
  0x52   : > { %v656_v12 = vsub.s32 32, %v655_v4  ;;  %v657_v58 = vshll.u32 %v648_v27, %v655_v4  ;;  %v660_v60 = vsub.s32 4294967266, %v655_v4  ;;  %vm827_vm9 = vcmp.lt.s32.totalorder %v2383_v56, 4 }
  0x53   : > { %vm1822_vm4 = vcmp.lt.s32.totalorder %v1821_v55, 0  ;;  %v829_v41 = vsel %vm827_vm9, %v817_v19, 2102212464  ;;  %v833_v47 = vsel %vm827_vm9, %v820_v21, 920167782  ;;  %v836_v63 = vsel %vm824_vm5, %v814_v17, %v817_v19 }
  0x54   : > { %v658_v31 = vshrl.u32 %v640_v42, %v656_v12  ;;  %v661_v5 = vadd.s32 127, %v660_v60  ;;  %v759_v26 = vsel %vm1822_vm4, 0, %v1821_v55  ;;  %v832_v42 = vsel %vm824_vm5, %v811_v14, %v814_v17 }
  0x55   : > { %v760_v27 = vsub.s32 32, %v759_v26  ;;  %v761_v29 = vshll.u32 %v2375_v35, %v759_v26  ;;  %v764_v30 = vsub.s32 4294967266, %v759_v26  ;;  %v828_v35 = vsel %vm824_vm5, %v808_v13, %v811_v14 }
  0x56   : > { %v659_v24 = vor.u32 %v658_v31, %v657_v58  ;;  %v662_v25 = vshll.u32 %v661_v5, 23  ;;  %v830_v45 = vsel %vm826_vm8, %v814_v17, %v829_v41  ;;  %v671_v0 = vsel %vm586_vm3, %v670_v48, %v2368_v22 }
  0x57   : > { %v762_v20 = vshrl.u32 %v744_v43, %v760_v27  ;;  %v765_v39 = vadd.s32 127, %v764_v30  ;;  %v834_v43 = vsel %vm826_vm8, %v817_v19, %v833_v47  ;;  %v837_v54 = vsel %vm827_vm9, %v823_v37, 1326507024 }
  0x58   : > { %v663_v32 = vor.u32 4788187, %v662_v25  ;;  %v666_v34 = vcvt.s32.f32 %v659_v24  ;;  %v835_v52 = vsel %vm825_vm7, %v832_v42, %v834_v43  ;;  %v831_v6 = vsel %vm825_vm7, %v828_v35, %v830_v45 }
  0x59   : > { %v763_v50 = vor.u32 %v762_v20, %v761_v29  ;;  %v766_v57 = vshll.u32 %v765_v39, 23  ;;  %v838_v10 = vsel %vm826_vm8, %v820_v21, %v837_v54  ;;  %v774_v60 = vsub.s32 4, %v2371_v28 }
  0x5a   : > { %v664_v44 = vand.u32 2147483647, %v663_v32  ;;  %v839_v12 = vsel %vm825_vm7, %v836_v63, %v838_v10  ;;  %v2439_v22 = vmul.u32.u64.low %v2394_v62, %v835_v52  ;;  %v2440_v48 = vmul.u32.u64.high %v2394_v62, %v835_v52, %v2439_v22  ;;  %v2477_v63 = vld [vmem:[%s2685_s4] ss:$0 sm:$0xff] }
  0x5b   : > { %v767_v2 = vor.u32 4788187, %v766_v57  ;;  %v770_v4 = vcvt.s32.f32 %v763_v50  ;;  %v2445_v55 = vmul.u32.u64.low %v2394_v62, %v839_v12  ;;  %v2446_v13 = vmul.u32.u64.high %v2394_v62, %v839_v12, %v2445_v55 }
  0x5c   : > { %v667_v59 = vmul.f32 %v666_v34, %v664_v44  ;;  %v673_v17 = vsel %vm2403_vm6, 0, %v671_v0  ;;  %v847_v5 = vmul.u32 %v2394_v62, %v831_v6  ;;  %v850_v7 = vadd.s32 1, %v2440_v48 }
  0x5d   : > { %v768_v58 = vand.u32 2147483647, %v767_v2  ;;  %v775_v23 = vsel %vm690_vm11, %v774_v60, %v2371_v28  ;;  %vm849_vm12 = vc.u32 %v2446_v13, %v2439_v22  ;;  %v677_v3 = vadd.s32 3, %v673_v17 }
  0x5e   : > { %v668_v11 = vxor.u32 2147483648, %v667_v59  ;;  %v851_v62 = vsel %vm849_vm12, %v850_v7, %v2440_v48  ;;  %v777_v26 = vsel %vm2458_vm10, 0, %v775_v23  ;;  %vm676_vm2 = vweird.f32 %v2257_v18 }
  0x5f   : > { %v771_v31 = vmul.f32 %v770_v4, %v768_v58  ;;  %v852_v25 = vadd.s32 %v851_v62, %v847_v5  ;;  %v678_v29 = vand.u32 3, %v677_v3  ;;  %v781_v28 = vadd.s32 3, %v777_v26 }
  0x60   : > { %v669_v14 = vsel %vm586_vm3, %v668_v11, %v667_v59  ;;  %v848_v58 = vadd.s32 %v2439_v22, %v2446_v13  ;;  %vm794_vm8 = vcmp.lt.s32.totalorder %v2360_v53, 0  ;;  %vm793_vm9 = vcmp.le.f32.partialorder %v792_v51, 0.7853982 }
  0x61   : > { %v672_v56 = vsel %vm2403_vm6, %v2257_v18, %v669_v14  ;;  %v772_v21 = vxor.u32 2147483648, %v771_v31  ;;  %v853_v27 = vadd.s32 536870912, %v852_v25  ;;  %vm683_vm13 = vcmp.eq.s32.totalorder %v678_v29, 2 }
  0x62   : > { %2018 = vcosq.f32 %v672_v56  ;;  %vm680_vm14 = vcmp.eq.s32.totalorder %v678_v29, 0  ;;  %v782_v39 = vand.u32 3, %v781_v28  ;;  %vm679_vm15 = vcmp.lt.s32.totalorder %v678_v29, 2 }
  0x63   : > { %2020 = vsinq.f32 %v672_v56  ;;  %v773_v24 = vsel %vm690_vm11, %v772_v21, %v771_v31  ;;  %v854_v30 = vshrl.u32 %v853_v27, 30  ;;  %vm780_vm6 = vweird.f32 %v2240_v9 }
  0x64   : > { %v776_v15 = vsel %vm2458_vm10, %v2240_v9, %v773_v24  ;;  %vm787_vm3 = vcmp.eq.s32.totalorder %v782_v39, 2  ;;  %vm784_vm4 = vcmp.eq.s32.totalorder %v782_v39, 0  ;;  %vm783_vm5 = vcmp.lt.s32.totalorder %v782_v39, 2 }
  0x65   : > { %2022 = vcosq.f32 %v776_v15  ;;  %v855_v32 = vshll.u32 %v854_v30, 30  ;;  %v878_v23 = vsub.s32 4, %v854_v30 }
  0x66   : > { %2024 = vsinq.f32 %v776_v15 }
  0x67   : > { %v856_v41 = vsub.s32 %v852_v25, %v855_v32  ;;  %v879_v15 = vsel %vm794_vm8, %v878_v23, %v854_v30 }
  0x68   : > { %v881_v28 = vsel %vm793_vm9, 0, %v879_v15 }
  0x69   : > { %v858_v35 = vsub.s32 0, %v856_v41  ;;  %v885_v51 = vadd.s32 3, %v881_v28 }
  0x6b   : > { %v1824_v57 = vmin.u32 %v858_v35, %v856_v41  ;;  %v886_v30 = vand.u32 3, %v885_v51 }
  0x6c   : > { %v2019_v34 = vpop.eup %2018 }
  0x6d   : > { %v2021_v37 = vpop.eup %2020  ;;  %v684_v20 = vxor.u32 2147483648, %v2019_v34  ;;  %v860_v18 = vclz %v1824_v57  ;;  %vm891_vm10 = vcmp.eq.s32.totalorder %v886_v30, 2  ;;  %vm888_vm11 = vcmp.eq.s32.totalorder %v886_v30, 0 }
  0x6e   : > { %v681_v42 = vxor.u32 2147483648, %v2021_v37  ;;  %vm887_vm12 = vcmp.lt.s32.totalorder %v886_v30, 2 }
  0x6f   : > { %v685_v44 = vsel %vm683_vm13, %v684_v20, %v2021_v37  ;;  %v2023_v47 = vpop.eup %2022  ;;  %v1825_v10 = vadd.s32 4294967294, %v860_v18  ;;  %vm884_vm13 = vweird.f32 %v2360_v53 }
  0x70   : > { %v682_v45 = vsel %vm680_vm14, %v2019_v34, %v681_v42  ;;  %v2025_v43 = vpop.eup %2024  ;;  %v788_v0 = vxor.u32 2147483648, %v2023_v47  ;;  %vm914_vm14 = vcmask 128000  }
  0x71   : > { %v686_v50 = vsel %vm679_vm15, %v682_v45, %v685_v44  ;;  %v785_v52 = vxor.u32 2147483648, %v2025_v43  ;;  %vm1826_vm7 = vcmp.lt.s32.totalorder %v1825_v10, 0 }
  0x72   : > { %v687_v59 = vsel %vm676_vm2, nan, %v686_v50  ;;  %v789_v2 = vsel %vm787_vm3, %v788_v0, %v2025_v43  ;;  %v863_v55 = vsel %vm1826_vm7, 0, %v1825_v10  ;;  %v2013_v0 = vld [vmem:[%s2686_s5 + $0x18] sm:$0xff]   ;;  %v2015_v10 = vld [vmem:[%s2686_s5 + $0x28] sm:$0xff]  }
  0x73   : > { %v896_v54 = vmul.f32 %v687_v59, %v687_v59  ;;  %v786_v4 = vsel %vm784_vm4, %v2023_v47, %v785_v52  ;;  %v864_v14 = vsub.s32 32, %v863_v55  ;;  %v865_v56 = vshll.u32 %v856_v41, %v863_v55 }
  0x74   : > { %v790_v11 = vsel %vm783_vm5, %v786_v4, %v789_v2  ;;  %v868_v9 = vsub.s32 4294967266, %v863_v55 }
  0x75   : > { %v905_v6 = vmul.f32 %v2477_v63, %v896_v54  ;;  %v791_v12 = vsel %vm780_vm6, nan, %v790_v11  ;;  %v866_v31 = vshrl.u32 %v848_v58, %v864_v14  ;;  %v2014_v54 = vld [vmem:[%s2686_s5 + $0x20] sm:$0xff]   ;;  %v2016_v11 = vld [vmem:[%s2686_s5 + $0x30] sm:$0xff]  }
  0x76   : > { %v897_v60 = vmul.f32 %v791_v12, %v791_v12  ;;  %v869_v5 = vadd.s32 127, %v868_v9  ;;  %v921_v9 = vld [vmem:[#allocation3] sm:$0xff] }
  0x77   : > { %v908_v48 = vadd.f32 %v905_v6, %v2253_v16  ;;  %v867_v7 = vor.u32 %v866_v31, %v865_v56  ;;  %v2017_v56 = vld [vmem:[%s2690_s9] sm:$0xff]  }
  0x78   : > { %v906_v17 = vmul.f32 %v2477_v63, %v897_v60  ;;  %v870_v21 = vshll.u32 %v869_v5, 23  ;;  %v922_v31 = vld [vmem:[#allocation3 + $0x8] sm:$0xff] }
  0x79   : > { %912 = vst.msk [vmem:[#allocation2] sm:$0xff] %vm911_vm1, %v908_v48  ;;  %v874_v22 = vcvt.s32.f32 %v867_v7 }
  0x7a   : > { %v909_v19 = vadd.f32 %v906_v17, %v2231_v8  ;;  %v871_v16 = vor.u32 4788187, %v870_v21  ;;  %v2012_v8 = vld [vmem:[%s2686_s5 + $0x10] sm:$0xff]  }
  0x7c   : > { %913 = vst.msk [vmem:[#allocation2 + $0x8] sm:$0xff] %vm911_vm1, %v909_v19  ;;  %v872_v13 = vand.u32 2147483647, %v871_v16 }
  0x7e   : > { %v875_v62 = vmul.f32 %v874_v22, %v872_v13 }
  0x80   : > { %v918_v3 = vld [vmem:[#allocation2] sm:$0xff]  ;;  %v876_v25 = vxor.u32 2147483648, %v875_v62 }
  0x82   : > { %v877_v27 = vsel %vm794_vm8, %v876_v25, %v875_v62 }
  0x83   : > { %v919_v24 = vld [vmem:[#allocation2 + $0x8] sm:$0xff]  ;;  %v880_v29 = vsel %vm793_vm9, %v2360_v53, %v877_v27 }
  0x84   : > { %v920_v26 = vpack.c.bf16 %v919_v24, %v918_v3  ;;  %2026 = vcosq.f32 %v880_v29  ;;  %v979_v50 = vld [vmem:[#allocation2 + $0x1] sm:$0xff] }
  0x85   : > { %2028 = vsinq.f32 %v880_v29  ;;  %v1041_v57 = vld [vmem:[#allocation2 + $0x2] sm:$0xff] }
  0x86   : > { %1897 = vmatmul.mubr.msk.bf16.vlgmr.msra.gmra.mrb[0].mxu0 %vm911_vm1, %v920_v26  ;;  %v1165_v18 = vld [vmem:[#allocation2 + $0x4] sm:$0xff] }
  0x87   : > { %1907 = vmatpush3.bf16.msra.mxu0 %v2012_v8  ;;  %1908 = vmatprep.mubr.msk.bf16.mxu0 %vm2081_vm0, %v2080_v1  ;;  %v1227_v12 = vld [vmem:[#allocation2 + $0x5] sm:$0xff] }
  0x88   : > { %1918 = vmatprep.subr.bf16.mxu0 %v2080_v1  ;;  %v1289_v58 = vld [vmem:[#allocation2 + $0x6] sm:$0xff] }
  0x8e   : > { %v2027_v32 = vpop.eup %2026 }
  0x8f   : > { %v2029_v34 = vpop.eup %2028  ;;  %v892_v37 = vxor.u32 2147483648, %v2027_v32 }
  0x90   : > { %v889_v20 = vxor.u32 2147483648, %v2029_v34 }
  0x91   : > { %v893_v39 = vsel %vm891_vm10, %v892_v37, %v2029_v34 }
  0x92   : > { %v890_v41 = vsel %vm888_vm11, %v2027_v32, %v889_v20 }
  0x93   : > { %v894_v42 = vsel %vm887_vm12, %v890_v41, %v893_v39 }
  0x94   : > { %v895_v44 = vsel %vm884_vm13, nan, %v894_v42 }
  0x95   : > { %v898_v35 = vmul.f32 %v895_v44, %v895_v44 }
  0x97   : > { %v907_v45 = vmul.f32 %v2477_v63, %v898_v35 }
  0x99   : > { %v910_v47 = vadd.f32 %v907_v45, %v2352_v61  ;;  %v1103_v61 = vld [vmem:[#allocation2 + $0x3] sm:$0xff] }
  0x9b   : > { %915 = vst.msk [vmem:[#allocation2 + $0x10] sm:$0x3f] %vm914_vm14, %v910_v47 }
  0xa2   : > { %v980_v43 = vld [vmem:[#allocation2 + $0x9] sm:$0xff] }
  0xa3   : > { %v1042_v59 = vld [vmem:[#allocation2 + $0xa] sm:$0xff]  ;;  %v981_v53 = vpack.c.bf16 %v980_v43, %v979_v50 }
  0xa4   : > { %v1043_v52 = vpack.c.bf16 %v1042_v59, %v1041_v57  ;;  %v1104_v63 = vld [vmem:[#allocation2 + $0xb] sm:$0xff] }
  0xa5   : > { %1903 = vmatmul.mubr.msk.bf16.vlgmr.msra.gmra.mrb[0].mxu1 %vm911_vm1, %v981_v53  ;;  %v1166_v2 = vld [vmem:[#allocation2 + $0xc] sm:$0xff]  ;;  %v1105_v4 = vpack.c.bf16 %v1104_v63, %v1103_v61 }
  0xa6   : > { %1909 = vmatmul.mubr.msk.bf16.vlgmr.msra.gmra.mrb[4].mxu0 %vm911_vm1, %v1043_v52  ;;  %1913 = vmatpush3.bf16.msra.mxu1 %v2013_v0  ;;  %v1167_v6 = vpack.c.bf16 %v1166_v2, %v1165_v18  ;;  %v1228_v48 = vld [vmem:[#allocation2 + $0xd] sm:$0xff] }
  0xa7   : > { %1914 = vmatprep.mubr.msk.bf16.mxu1 %vm2081_vm0, %v2080_v1  ;;  %1919 = vmatpush3.bf16.msra.mxu0 %v2014_v54  ;;  %v1290_v60 = vld [vmem:[#allocation2 + $0xe] sm:$0xff]  ;;  %v1229_v55 = vpack.c.bf16 %v1228_v48, %v1227_v12 }
  0xa8   : > { %1920 = vmatprep.mubr.msk.bf16.mxu0 %vm2081_vm0, %v2080_v1  ;;  %1924 = vmatprep.subr.bf16.mxu1 %v2080_v1  ;;  %v1291_v14 = vpack.c.bf16 %v1290_v60, %v1289_v58 }
  0xa9   : > { %1930 = vmatprep.subr.bf16.mxu0 %v2080_v1 }
  0xad   : > { %1915 = vmatmul.mubr.msk.bf16.vlgmr.msra.gmra.mrb[4].mxu1 %vm911_vm1, %v1105_v4 }
  0xae   : > { %1921 = vmatmul.mubr.msk.bf16.vlgmr.msra.gmra.mrb[8].mxu0 %vm911_vm1, %v1167_v6  ;;  %1925 = vmatpush3.bf16.msra.mxu1 %v2015_v10 }
  0xaf   : > { %1926 = vmatprep.mubr.msk.bf16.mxu1 %vm2081_vm0, %v2080_v1  ;;  %1931 = vmatpush3.bf16.msra.mxu0 %v2016_v11 }
  0xb0   : > { %1932 = vmatprep.mubr.msk.bf16.mxu0 %vm2081_vm0, %v2080_v1  ;;  %1936 = vmatprep.subr.bf16.mxu1 %v2080_v1 }
  0xb5   : > { %1927 = vmatmul.mubr.msk.bf16.vlgmr.msra.gmra.mrb[8].mxu1 %vm911_vm1, %v1229_v55 }
  0xb6   : > { %1933 = vmatmul.mubr.msk.bf16.vlgmr.msra.gmra.mrb[12].mxu0 %vm911_vm1, %v1291_v14  ;;  %1938 = vmatprep.mubr.msk.bf16.mxu1 %vm2081_vm0, %v2080_v1  ;;  %v1854_v14 = vld [vmem:[%s2687_s6] ss:$0 sm:$0xff] }
  0xb7   : > { %1937 = vmatpush3.bf16.msra.mxu1 %v2017_v56 }
 0x159   : > { %v968_v17 = vpop.f32.mrb[0].mxu0 }
 0x15a   : > { %v975_v5 = vadd.f32 %v968_v17, %v921_v9  ;;  %v1898_v19 = vpop.f32.mrb[1].mxu0  ;;  %v1855_v9 = vld [vmem:[%s2688_s7] ss:$0 sm:$0xff] }
 0x15b   : > { %v971_v7 = vpop.f32.mrb[2].mxu0 }
 0x15c   : > { %977 = vst.msk [vmem:[#allocation3] sm:$0xff] %vm911_vm1, %v975_v5  ;;  %v976_v21 = vadd.f32 %v971_v7, %v922_v31  ;;  %v1899_v16 = vpop.f32.mrb[3].mxu0 }
 0x15e   : > { %978 = vst.msk [vmem:[#allocation3 + $0x8] sm:$0xff] %vm911_vm1, %v976_v21 }
 0x163   : > { %v982_v22 = vld [vmem:[#allocation3] sm:$0xff] }
 0x165   : > { %v983_v1 = vld [vmem:[#allocation3 + $0x8] sm:$0xff] }
 0x178   : > { %v1030_v13 = vpop.f32.mrb[0].mxu1 }
 0x179   : > { %v1092_v23 = vpop.f32.mrb[4].mxu0  ;;  %v1037_v3 = vadd.f32 %v1030_v13, %v982_v22  ;;  %v1904_v62 = vpop.f32.mrb[1].mxu1 }
 0x17a   : > { %v1910_v24 = vpop.f32.mrb[5].mxu0  ;;  %v1033_v25 = vpop.f32.mrb[2].mxu1 }
 0x17b   : > { %v1095_v15 = vpop.f32.mrb[6].mxu0  ;;  %1039 = vst.msk [vmem:[#allocation3] sm:$0xff] %vm911_vm1, %v1037_v3  ;;  %v1038_v8 = vadd.f32 %v1033_v25, %v983_v1  ;;  %v1905_v26 = vpop.f32.mrb[3].mxu1 }
 0x17c   : > { %v1911_v27 = vpop.f32.mrb[7].mxu0 }
 0x17d   : > { %1040 = vst.msk [vmem:[#allocation3 + $0x8] sm:$0xff] %vm911_vm1, %v1038_v8 }
 0x180   : > { %v1154_v29 = vpop.f32.mrb[4].mxu1 }
 0x181   : > { %v1216_v28 = vpop.f32.mrb[8].mxu0  ;;  %v1916_v51 = vpop.f32.mrb[5].mxu1 }
 0x182   : > { %v1922_v30 = vpop.f32.mrb[9].mxu0  ;;  %v1044_v32 = vld [vmem:[#allocation3] sm:$0xff]  ;;  %v1157_v34 = vpop.f32.mrb[6].mxu1 }
 0x183   : > { %v1219_v37 = vpop.f32.mrb[10].mxu0  ;;  %v1099_v20 = vadd.f32 %v1092_v23, %v1044_v32  ;;  %v1917_v39 = vpop.f32.mrb[7].mxu1 }
 0x184   : > { %v1923_v41 = vpop.f32.mrb[11].mxu0  ;;  %v1045_v42 = vld [vmem:[#allocation3 + $0x8] sm:$0xff] }
 0x185   : > { %1101 = vst.msk [vmem:[#allocation3] sm:$0xff] %vm911_vm1, %v1099_v20  ;;  %v1100_v44 = vadd.f32 %v1095_v15, %v1045_v42 }
 0x187   : > { %1102 = vst.msk [vmem:[#allocation3 + $0x8] sm:$0xff] %vm911_vm1, %v1100_v44 }
 0x188   : > { %v1278_v35 = vpop.f32.mrb[8].mxu1 }
 0x189   : > { %v1340_v45 = vpop.f32.mrb[12].mxu0  ;;  %v1928_v47 = vpop.f32.mrb[9].mxu1 }
 0x18a   : > { %v1934_v50 = vpop.f32.mrb[13].mxu0  ;;  %v1281_v57 = vpop.f32.mrb[10].mxu1 }
 0x18b   : > { %v1343_v43 = vpop.f32.mrb[14].mxu0  ;;  %v1929_v59 = vpop.f32.mrb[11].mxu1 }
 0x18c   : > { %v1935_v0 = vpop.f32.mrb[15].mxu0  ;;  %v1106_v53 = vld [vmem:[#allocation3] sm:$0xff] }
 0x18d   : > { %v1161_v52 = vadd.f32 %v1154_v29, %v1106_v53 }
 0x18e   : > { %v1107_v54 = vld [vmem:[#allocation3 + $0x8] sm:$0xff] }
 0x18f   : > { %1163 = vst.msk [vmem:[#allocation3] sm:$0xff] %vm911_vm1, %v1161_v52  ;;  %v1162_v61 = vadd.f32 %v1157_v34, %v1107_v54 }
 0x191   : > { %1164 = vst.msk [vmem:[#allocation3 + $0x8] sm:$0xff] %vm911_vm1, %v1162_v61 }
 0x196   : > { %v1168_v63 = vld [vmem:[#allocation3] sm:$0xff] }
 0x197   : > { %v1223_v18 = vadd.f32 %v1216_v28, %v1168_v63 }
 0x198   : > { %v1169_v2 = vld [vmem:[#allocation3 + $0x8] sm:$0xff] }
 0x199   : > { %1225 = vst.msk [vmem:[#allocation3] sm:$0xff] %vm911_vm1, %v1223_v18  ;;  %v1224_v4 = vadd.f32 %v1219_v37, %v1169_v2 }
 0x19b   : > { %1226 = vst.msk [vmem:[#allocation3 + $0x8] sm:$0xff] %vm911_vm1, %v1224_v4 }
 0x1a0   : > { %v1230_v6 = vld [vmem:[#allocation3] sm:$0xff] }
 0x1a1   : > { %v1285_v10 = vadd.f32 %v1278_v35, %v1230_v6 }
 0x1a2   : > { %v1231_v11 = vld [vmem:[#allocation3 + $0x8] sm:$0xff] }
 0x1a3   : > { %1287 = vst.msk [vmem:[#allocation3] sm:$0xff] %vm911_vm1, %v1285_v10  ;;  %v1286_v12 = vadd.f32 %v1281_v57, %v1231_v11 }
 0x1a5   : > { %1288 = vst.msk [vmem:[#allocation3 + $0x8] sm:$0xff] %vm911_vm1, %v1286_v12 }
 0x1aa   : > { %v1292_v48 = vld [vmem:[#allocation3] sm:$0xff] }
 0x1ab   : > { %v1347_v58 = vadd.f32 %v1340_v45, %v1292_v48 }
 0x1ac   : > { %v1293_v60 = vld [vmem:[#allocation3 + $0x8] sm:$0xff] }
 0x1ad   : > { %1349 = vst.msk [vmem:[#allocation3] sm:$0xff] %vm911_vm1, %v1347_v58  ;;  %v1348_v55 = vadd.f32 %v1343_v43, %v1293_v60 }
 0x1af   : > { %1350 = vst.msk [vmem:[#allocation3 + $0x8] sm:$0xff] %vm911_vm1, %v1348_v55 }
 0x1b4   : > { %v1351_v56 = vld [vmem:[#allocation3] sm:$0xff] }
 0x1b5   : > { %v2556_v17 = vadd.f32 %v1854_v14, %v1351_v56 }
 0x1b6   : > { %v1352_v31 = vld [vmem:[#allocation3 + $0x8] sm:$0xff] }
 0x1b7   : > { %v2558_v5 = vadd.f32 %v1854_v14, %v1352_v31  ;;  %v2561_v19 = vmul.f32 %v1855_v9, %v2556_v17 }
 0x1b9   : > { %v2564_v7 = vmul.f32 %v1855_v9, %v2558_v5  ;;  %v1372_v21 = vand.u32 2147483647, %v2561_v19  ;;  %v1375_v16 = vand.u32 2139095040, %v2561_v19  ;;  %vm1374_vm14 = vcmp.lt.s32.totalorder %v2561_v19, 0 }
 0x1bb   : > { %v1376_v22 = vshrl.u32 %v1375_v16, 23  ;;  %v1379_v13 = vand.u32 8388607, %v1372_v21  ;;  %v1479_v1 = vand.u32 2139095040, %v2564_v7  ;;  %v1476_v3 = vand.u32 2147483647, %v2564_v7 }
 0x1bd   : > { %v1856_v23 = vadd.s32 4294967169, %v1376_v22  ;;  %v1480_v62 = vshrl.u32 %v1479_v1, 23  ;;  %v1380_v25 = vor.u32 8388608, %v1379_v13  ;;  %v1483_v8 = vand.u32 8388607, %v1476_v3 }
 0x1bf   : > { %v1382_v24 = vadd.s32 1, %v1856_v23  ;;  %v1860_v15 = vadd.s32 4294967169, %v1480_v62  ;;  %v2574_v51 = vshll.u32 %v1380_v25, 8  ;;  %v1484_v34 = vor.u32 8388608, %v1483_v8 }
 0x1c1   : > { %vm1383_vm0 = vcmp.gt.s32.totalorder %v1382_v24, 0  ;;  %v1486_v27 = vadd.s32 1, %v1860_v15  ;;  %v1524_v58 = vshll.u32 %v1484_v34, 8 }
 0x1c2   : > { %v1384_v26 = vsel %vm1383_vm0, %v1382_v24, 0  ;;  %vm1373_vm0 = vcmp.le.f32.partialorder %v1372_v21, 0.7853982 }
 0x1c3   : > { %v1385_v29 = vshrl.u32 %v1384_v26, 5  ;;  %v1386_v28 = vand.u32 31, %v1384_v26  ;;  %vm1487_vm15 = vcmp.gt.s32.totalorder %v1486_v27, 0 }
 0x1c4   : > { %v1488_v0 = vsel %vm1487_vm15, %v1486_v27, 0  ;;  %vm1478_vm15 = vcmp.lt.s32.totalorder %v2564_v7, 0 }
 0x1c5   : > { %v1387_v30 = vsub.s32 32, %v1386_v28  ;;  %v1389_v32 = vshll.u32 %v2082_v33, %v1386_v28  ;;  %v1392_v37 = vshll.u32 %v2083_v36, %v1386_v28  ;;  %v1395_v20 = vshll.u32 %v2084_v38, %v1386_v28 }
 0x1c6   : > { %v1398_v39 = vshll.u32 %v2085_v40, %v1386_v28  ;;  %v1401_v41 = vshll.u32 %v2086_v46, %v1386_v28  ;;  %vm1404_vm2 = vcmp.lt.s32.totalorder %v1385_v29, 1  ;;  %vm1406_vm3 = vcmp.lt.s32.totalorder %v1385_v29, 3 }
 0x1c7   : > { %v1390_v42 = vshrl.u32 %v2083_v36, %v1387_v30  ;;  %v1393_v44 = vshrl.u32 %v2084_v38, %v1387_v30  ;;  %v1396_v35 = vshrl.u32 %v2085_v40, %v1387_v30  ;;  %v1388_v45 = vshrl.u32 %v2082_v33, %v1387_v30 }
 0x1c8   : > { %v1399_v47 = vshrl.u32 %v2086_v46, %v1387_v30  ;;  %v1402_v50 = vshrl.u32 %v2087_v49, %v1387_v30  ;;  %vm1407_vm4 = vcmp.lt.s32.totalorder %v1385_v29, 4  ;;  %v1490_v54 = vand.u32 31, %v1488_v0 }
 0x1c9   : > { %v1391_v57 = vor.u32 %v1390_v42, %v1389_v32  ;;  %v1394_v43 = vor.u32 %v1393_v44, %v1392_v37  ;;  %v1397_v59 = vor.u32 %v1396_v35, %v1395_v20  ;;  %vm1405_vm5 = vcmp.lt.s32.totalorder %v1385_v29, 2 }
 0x1ca   : > { %v1400_v53 = vor.u32 %v1399_v47, %v1398_v39  ;;  %v1403_v52 = vor.u32 %v1402_v50, %v1401_v41  ;;  %v1491_v11 = vsub.s32 32, %v1490_v54  ;;  %v1489_v56 = vshrl.u32 %v1488_v0, 5 }
 0x1cb   : > { %v1408_v61 = vsel %vm1404_vm2, %v1388_v45, %v1391_v57  ;;  %v1409_v63 = vsel %vm1407_vm4, %v1397_v59, 2102212464  ;;  %v1412_v18 = vsel %vm1404_vm2, %v1391_v57, %v1394_v43  ;;  %v1416_v2 = vsel %vm1404_vm2, %v1394_v43, %v1397_v59 }
 0x1cc   : > { %v1410_v4 = vsel %vm1406_vm3, %v1394_v43, %v1409_v63  ;;  %v1413_v6 = vsel %vm1407_vm4, %v1400_v53, 920167782  ;;  %v1417_v10 = vsel %vm1407_vm4, %v1403_v52, 1326507024  ;;  %v1493_v13 = vshll.u32 %v2082_v33, %v1490_v54 }
 0x1cd   : > { %v1414_v12 = vsel %vm1406_vm3, %v1397_v59, %v1413_v6  ;;  %v1418_v48 = vsel %vm1406_vm3, %v1400_v53, %v1417_v10  ;;  %v1411_v60 = vsel %vm1405_vm5, %v1408_v61, %v1410_v4  ;;  %v1494_v1 = vshrl.u32 %v2083_v36, %v1491_v11 }
 0x1ce   : > { %v1415_v55 = vsel %vm1405_vm5, %v1412_v18, %v1414_v12  ;;  %v1419_v14 = vsel %vm1405_vm5, %v1416_v2, %v1418_v48  ;;  %v1496_v23 = vshll.u32 %v2083_v36, %v1490_v54  ;;  %v1497_v62 = vshrl.u32 %v2084_v38, %v1491_v11 }
 0x1cf   : > { %v2595_v9 = vmul.u32.u64.low %v2574_v51, %v1419_v14  ;;  %v2596_v31 = vmul.u32.u64.high %v2574_v51, %v1419_v14, %v2595_v9  ;;  %v2599_v16 = vmul.u32.u64.low %v2574_v51, %v1415_v55  ;;  %v2600_v22 = vmul.u32.u64.high %v2574_v51, %v1415_v55, %v2599_v16 }
 0x1d0   : > { %v1499_v24 = vshll.u32 %v2084_v38, %v1490_v54  ;;  %v1500_v25 = vshrl.u32 %v2085_v40, %v1491_v11  ;;  %v1502_v15 = vshll.u32 %v2085_v40, %v1490_v54  ;;  %v1503_v8 = vshrl.u32 %v2086_v46, %v1491_v11 }
 0x1d1   : > { %v1495_v26 = vor.u32 %v1494_v1, %v1493_v13  ;;  %v1498_v27 = vor.u32 %v1497_v62, %v1496_v23  ;;  %v1505_v29 = vshll.u32 %v2086_v46, %v1490_v54  ;;  %v1506_v28 = vshrl.u32 %v2087_v49, %v1491_v11 }
 0x1d2   : > { %v1427_v30 = vmul.u32 %v2574_v51, %v1411_v60  ;;  %vm1429_vm6 = vc.u32 %v2596_v31, %v2599_v16  ;;  %v1430_v36 = vadd.s32 1, %v2600_v22  ;;  %v1501_v38 = vor.u32 %v1500_v25, %v1499_v24 }
 0x1d3   : > { %v1492_v32 = vshrl.u32 %v2082_v33, %v1491_v11  ;;  %v1504_v34 = vor.u32 %v1503_v8, %v1502_v15  ;;  %v1507_v40 = vor.u32 %v1506_v28, %v1505_v29  ;;  %vm1508_vm7 = vcmp.lt.s32.totalorder %v1489_v56, 1 }
 0x1d4   : > { %v1431_v37 = vsel %vm1429_vm6, %v1430_v36, %v2600_v22  ;;  %vm1510_vm8 = vcmp.lt.s32.totalorder %v1489_v56, 3  ;;  %vm1511_vm9 = vcmp.lt.s32.totalorder %v1489_v56, 4  ;;  %v1516_v46 = vsel %vm1508_vm7, %v1495_v26, %v1498_v27 }
 0x1d5   : > { %v1432_v20 = vadd.s32 %v1431_v37, %v1427_v30  ;;  %v1513_v49 = vsel %vm1511_vm9, %v1501_v38, 2102212464  ;;  %v1517_v39 = vsel %vm1511_vm9, %v1504_v34, 920167782  ;;  %v1520_v51 = vsel %vm1508_vm7, %v1498_v27, %v1501_v38 }
 0x1d6   : > { %vm1509_vm10 = vcmp.lt.s32.totalorder %v1489_v56, 2  ;;  %v1512_v41 = vsel %vm1508_vm7, %v1492_v32, %v1495_v26  ;;  %v1518_v42 = vsel %vm1510_vm8, %v1501_v38, %v1517_v39  ;;  %v1521_v44 = vsel %vm1511_vm9, %v1507_v40, 1326507024 }
 0x1d7   : > { %v1433_v35 = vadd.s32 536870912, %v1432_v20  ;;  %v1514_v45 = vsel %vm1510_vm8, %v1498_v27, %v1513_v49  ;;  %v1519_v47 = vsel %vm1509_vm10, %v1516_v46, %v1518_v42  ;;  %v1522_v33 = vsel %vm1510_vm8, %v1504_v34, %v1521_v44 }
 0x1d8   : > { %v1523_v50 = vsel %vm1509_vm10, %v1520_v51, %v1522_v33  ;;  %v2619_v57 = vmul.u32.u64.low %v1524_v58, %v1519_v47  ;;  %v2620_v43 = vmul.u32.u64.high %v1524_v58, %v1519_v47, %v2619_v57  ;;  %v1515_v52 = vsel %vm1509_vm10, %v1512_v41, %v1514_v45 }
 0x1d9   : > { %v1434_v59 = vshrl.u32 %v1433_v35, 30  ;;  %v2622_v0 = vmul.u32.u64.low %v1524_v58, %v1523_v50  ;;  %v2623_v53 = vmul.u32.u64.high %v1524_v58, %v1523_v50, %v2622_v0  ;;  %v1531_v18 = vmul.u32 %v1524_v58, %v1515_v52 }
 0x1da   : > { %v1534_v61 = vadd.s32 1, %v2620_v43  ;;  %v1428_v9 = vadd.s32 %v2599_v16, %v2596_v31  ;;  %vm2638_vm2 = vcmp.le.f32.partialorder %v1476_v3, 0.7853982  ;;  %vm1464_vm6 = vweird.f32 %v2561_v19 }
 0x1db   : > { %v1435_v54 = vshll.u32 %v1434_v59, 30  ;;  %vm1533_vm11 = vc.u32 %v2623_v53, %v2619_v57  ;;  %v1532_v38 = vadd.s32 %v2619_v57, %v2623_v53  ;;  %v1458_v34 = vsub.s32 4, %v1434_v59 }
 0x1dc   : > { %v1535_v2 = vsel %vm1533_vm11, %v1534_v61, %v2620_v43  ;;  %vm1568_vm10 = vweird.f32 %v2564_v7 }
 0x1dd   : > { %v1436_v63 = vsub.s32 %v1432_v20, %v1435_v54  ;;  %v1536_v6 = vadd.s32 %v1535_v2, %v1531_v18  ;;  %v1459_v41 = vsel %vm1374_vm14, %v1458_v34, %v1434_v59 }
 0x1de   : > { %v1461_v44 = vsel %vm1373_vm0, 0, %v1459_v41 }
 0x1df   : > { %v1438_v4 = vsub.s32 0, %v1436_v63  ;;  %v1537_v11 = vadd.s32 536870912, %v1536_v6  ;;  %v1465_v50 = vadd.s32 3, %v1461_v44 }
 0x1e1   : > { %v1857_v10 = vmin.u32 %v1438_v4, %v1436_v63  ;;  %v1538_v48 = vshrl.u32 %v1537_v11, 30  ;;  %v1466_v53 = vand.u32 3, %v1465_v50 }
 0x1e3   : > { %v1440_v12 = vclz %v1857_v10  ;;  %v1539_v55 = vshll.u32 %v1538_v48, 30  ;;  %v1562_v33 = vsub.s32 4, %v1538_v48  ;;  %vm1468_vm3 = vcmp.eq.s32.totalorder %v1466_v53, 0 }
 0x1e4   : > { %vm1471_vm4 = vcmp.eq.s32.totalorder %v1466_v53, 2  ;;  %vm1467_vm5 = vcmp.lt.s32.totalorder %v1466_v53, 2 }
 0x1e5   : > { %v1858_v60 = vadd.s32 4294967294, %v1440_v12  ;;  %v1540_v56 = vsub.s32 %v1536_v6, %v1539_v55  ;;  %v1563_v59 = vsel %vm1478_vm15, %v1562_v33, %v1538_v48 }
 0x1e6   : > { %v1565_v18 = vsel %vm2638_vm2, 0, %v1563_v59 }
 0x1e7   : > { %vm1859_vm12 = vcmp.lt.s32.totalorder %v1858_v60, 0  ;;  %v1542_v13 = vsub.s32 0, %v1540_v56  ;;  %v1569_v4 = vadd.s32 3, %v1565_v18 }
 0x1e8   : > { %v1443_v14 = vsel %vm1859_vm12, 0, %v1858_v60 }
 0x1e9   : > { %v1444_v22 = vsub.s32 32, %v1443_v14  ;;  %v1448_v58 = vsub.s32 4294967266, %v1443_v14  ;;  %v1445_v1 = vshll.u32 %v1436_v63, %v1443_v14  ;;  %v1861_v24 = vmin.u32 %v1542_v13, %v1540_v56 }
 0x1ea   : > { %v1570_v10 = vand.u32 3, %v1569_v4 }
 0x1eb   : > { %v1446_v23 = vshrl.u32 %v1428_v9, %v1444_v22  ;;  %v1449_v62 = vadd.s32 127, %v1448_v58  ;;  %v1544_v8 = vclz %v1861_v24  ;;  %v1864_v9 = vld [vmem:[%s2689_s8] ss:$0 sm:$0xff] }
 0x1ec   : > { %vm1575_vm7 = vcmp.eq.s32.totalorder %v1570_v10, 2  ;;  %vm1572_vm8 = vcmp.eq.s32.totalorder %v1570_v10, 0  ;;  %vm1571_vm9 = vcmp.lt.s32.totalorder %v1570_v10, 2 }
 0x1ed   : > { %v1447_v25 = vor.u32 %v1446_v23, %v1445_v1  ;;  %v1450_v15 = vshll.u32 %v1449_v62, 23  ;;  %v1862_v27 = vadd.s32 4294967294, %v1544_v8 }
 0x1ef   : > { %v1451_v26 = vor.u32 4788187, %v1450_v15  ;;  %v1454_v28 = vcvt.s32.f32 %v1447_v25  ;;  %vm1863_vm13 = vcmp.lt.s32.totalorder %v1862_v27, 0  ;;  %v1865_v15 = vld [vmem:[%s2691_s10] ss:$0 sm:$0xff] }
 0x1f0   : > { %v1547_v36 = vsel %vm1863_vm13, 0, %v1862_v27 }
 0x1f1   : > { %v1452_v29 = vand.u32 2147483647, %v1451_v26  ;;  %v1548_v31 = vsub.s32 32, %v1547_v36  ;;  %v1552_v16 = vsub.s32 4294967266, %v1547_v36  ;;  %v1549_v40 = vshll.u32 %v1540_v56, %v1547_v36 }
 0x1f3   : > { %v1455_v30 = vmul.f32 %v1454_v28, %v1452_v29  ;;  %v1550_v37 = vshrl.u32 %v1532_v38, %v1548_v31  ;;  %v1553_v46 = vadd.s32 127, %v1552_v16  ;;  %v2038_v29 = vld [vmem:[%s2214_s24] sm:$0xff] }
 0x1f5   : > { %v1456_v32 = vxor.u32 2147483648, %v1455_v30  ;;  %v1551_v39 = vor.u32 %v1550_v37, %v1549_v40  ;;  %v1554_v51 = vshll.u32 %v1553_v46, 23 }
 0x1f7   : > { %v1457_v20 = vsel %vm1374_vm14, %v1456_v32, %v1455_v30  ;;  %v1555_v42 = vor.u32 4788187, %v1554_v51  ;;  %v1558_v45 = vcvt.s32.f32 %v1551_v39 }
 0x1f8   : > { %v1460_v49 = vsel %vm1373_vm0, %v2561_v19, %v1457_v20 }
 0x1f9   : > { %2030 = vcosq.f32 %v1460_v49  ;;  %v1556_v35 = vand.u32 2147483647, %v1555_v42 }
 0x1fa   : > { %2032 = vsinq.f32 %v1460_v49 }
 0x1fb   : > { %v1559_v47 = vmul.f32 %v1558_v45, %v1556_v35 }
 0x1fd   : > { %v1560_v57 = vxor.u32 2147483648, %v1559_v47 }
 0x1ff   : > { %v1561_v43 = vsel %vm1478_vm15, %v1560_v57, %v1559_v47 }
 0x200   : > { %v1564_v52 = vsel %vm2638_vm2, %v2564_v7, %v1561_v43 }
 0x201   : > { %2034 = vcosq.f32 %v1564_v52 }
 0x202   : > { %2036 = vsinq.f32 %v1564_v52 }
 0x203   : > { %v2031_v0 = vpop.eup %2030 }
 0x204   : > { %v2033_v54 = vpop.eup %2032  ;;  %v1472_v61 = vxor.u32 2147483648, %v2031_v0 }
 0x205   : > { %v1469_v63 = vxor.u32 2147483648, %v2033_v54 }
 0x206   : > { %v1473_v2 = vsel %vm1471_vm4, %v1472_v61, %v2033_v54 }
 0x207   : > { %v1470_v3 = vsel %vm1468_vm3, %v2031_v0, %v1469_v63 }
 0x208   : > { %v1474_v6 = vsel %vm1467_vm5, %v1470_v3, %v1473_v2 }
 0x209   : > { %v1475_v12 = vsel %vm1464_vm6, nan, %v1474_v6 }
 0x20a   : > { %v1580_v56 = vmul.f32 %v1475_v12, %v1475_v12 }
 0x20b   : > { %v2035_v11 = vpop.eup %2034 }
 0x20c   : > { %v2037_v48 = vpop.eup %2036  ;;  %v1576_v60 = vxor.u32 2147483648, %v2035_v11  ;;  %v1588_v1 = vmul.f32 %v1864_v9, %v1580_v56 }
 0x20d   : > { %v1573_v55 = vxor.u32 2147483648, %v2037_v48 }
 0x20e   : > { %v1577_v14 = vsel %vm1575_vm7, %v1576_v60, %v2037_v48  ;;  %v1590_v62 = vadd.f32 %v1588_v1, %v2556_v17 }
 0x20f   : > { %v1574_v22 = vsel %vm1572_vm8, %v2035_v11, %v1573_v55 }
 0x210   : > { %v1578_v19 = vsel %vm1571_vm9, %v1574_v22, %v1577_v14 }
 0x211   : > { %v1579_v58 = vsel %vm1568_vm10, nan, %v1578_v19 }
 0x212   : > { %v1581_v13 = vmul.f32 %v1579_v58, %v1579_v58 }
 0x214   : > { %v1589_v23 = vmul.f32 %v1864_v9, %v1581_v13 }
 0x216   : > { %v1591_v24 = vadd.f32 %v1589_v23, %v2558_v5  ;;  %v2039_v5 = vld [vmem:[%s2214_s24 + $0x8] sm:$0xff] }
 0x218   : > { %v1592_v25 = vpack.c.bf16 %v1591_v24, %v1590_v62 }
 0x21a   : > { %1939 = vmatmul.mubr.msk.bf16.vlgmr.msra.gmra.mrb[12].mxu1 %vm911_vm1, %v1592_v25 }
 0x2ed   : > { %v1645_v8 = vpop.f32.mrb[12].mxu1 }
 0x2ee   : > { %v1646_v7 = vadd.f32 %v1865_v15, %v1645_v8  ;;  %v1940_v26 = vpop.f32.mrb[13].mxu1 }
 0x2ef   : > { %v1648_v27 = vpop.f32.mrb[14].mxu1 }
 0x2f0   : > { %v1652_v28 = vadd.f32 %v2038_v29, %v1646_v7  ;;  %v1649_v17 = vadd.f32 %v1865_v15, %v1648_v27  ;;  %v1941_v30 = vpop.f32.mrb[15].mxu1 }
 0x2f2   : > { %1654 = vst.msk [vmem:[%s542_s28] sm:$0xff] %vm911_vm1, %v1652_v28  ;;  %v1653_v36 = vadd.f32 %v2039_v5, %v1649_v17 }
 0x2f4   : > { %1655 = vst.msk [vmem:[%s542_s28 + $0x8] sm:$0xff] %vm911_vm1, %v1653_v36 }
 0x2f5 PF: > { %s21_s21 = sadd.s32 1, %s2078_s21   ;;  %s2700_s17 = smov %s2070_s19 }
 0x2f6   : > { %p18_p12 = scmp.ge.s32.totalorder %s21_s21, 10   ;;  %s2701_s18 = smov %s2074_s20 }
 0x2f7   : > { %s2702_s19 = smov %s2705_s22  ;;  %s2703_s20 = smov %s2709_s23 }
 0x2f8   :  { %20 = sbr.rel (!%p18_p12) target bundleno = 3 (0x3), region = 106 }

</bundles_post_ra>
